<compile_context>
chip_gen: v7x
topology: tpu7x:2x2x1
jax: 0.10.0
libtpu: 0.0.40
codegen_flags: <defaults>
</compile_context>

<pallas_src>
import functools

import jax
import jax.numpy as jnp
from jax.experimental import pallas as pl
from jax.experimental.pallas import tpu as pltpu

EPS = 1e-5
NEG_SLOPE = 0.01          # InPlaceABN default leaky_relu slope
LANES = 128
TILE_M = 256              # rows per grid step (multiple of 8/16 sublane packing)
VMEM_LIMIT = 32 * 1024 * 1024


def _round_up(x, m):
    return (x + m - 1) // m * m


# --------------------------------------------------------------------------
# Pass A: conv-as-matmul + per-channel sum / sumsq accumulation
# --------------------------------------------------------------------------
def _matmul_stats_kernel(lhs_ref, w_ref, y_ref, stats_ref, *, m_true):
    i = pl.program_id(0)
    tm = y_ref.shape[0]

    @pl.when(i == 0)
    def _init():
        stats_ref[...] = jnp.zeros_like(stats_ref)

    # MXU matmul: bf16 x bf16 -> f32 accumulate.
    y = jnp.dot(lhs_ref[...], w_ref[...], preferred_element_type=jnp.float32)
    y_ref[...] = y

    # Mask rows that are pure M-padding so they never pollute the BN stats.
    row = jax.lax.broadcasted_iota(jnp.int32, (tm, 1), 0) + i * tm
    yv = jnp.where(row < m_true, y, 0.0)
    ps = jnp.sum(yv, axis=0, keepdims=True)          # (1, Cp)
    pss = jnp.sum(yv * yv, axis=0, keepdims=True)    # (1, Cp)
    stats_ref[...] += jnp.concatenate([ps, pss], axis=0)


# --------------------------------------------------------------------------
# Pass B: y * scale + shift -> leaky_relu [-> relu] [-> +residual -> relu]
# --------------------------------------------------------------------------
def _bn_act_kernel(y_ref, ss_ref, out_ref, *, neg_slope, extra_relu):
    z = y_ref[...] * ss_ref[0:1, :] + ss_ref[1:2, :]
    z = jnp.where(z >= 0, z, neg_slope * z)          # InPlaceABN leaky_relu
    if extra_relu:
        z = jnp.maximum(z, 0.0)                      # following nn.ReLU
    out_ref[...] = z.astype(out_ref.dtype)


def _bn_act_residual_kernel(y_ref, ss_ref, res_ref, out_ref, *, neg_slope):
    z = y_ref[...] * ss_ref[0:1, :] + ss_ref[1:2, :]
    z = jnp.where(z >= 0, z, neg_slope * z)          # InPlaceABN leaky_relu
    z = jnp.maximum(z + res_ref[...], 0.0)           # += residual ; ReLU
    out_ref[...] = z.astype(out_ref.dtype)


# --------------------------------------------------------------------------
# One conv(+BN+act) stage = two pallas_calls
# --------------------------------------------------------------------------
def _matmul_bn_act(lhs, w_pad, gamma_pad, beta_pad, *, m_true, tile_m, eps,
                   neg_slope, extra_relu, residual=None,
                   out_dtype=jnp.bfloat16):
    """lhs: (Mp, K)  w_pad: (K, Cp)  gamma/beta: (Cp,)  residual: (Mp, Cp)."""
    mp, k = lhs.shape
    cp = w_pad.shape[1]
    n_tiles = mp // tile_m

    lhs = lhs.astype(jnp.bfloat16)
    w_pad = w_pad.astype(jnp.bfloat16)

    # ---- pass A: matmul + stats ------------------------------------------
    y, stats = pl.pallas_call(
        functools.partial(_matmul_stats_kernel, m_true=m_true),
        grid=(n_tiles,),
        in_specs=[pl.BlockSpec((tile_m, k), lambda i: (i, 0)),
                  pl.BlockSpec((k, cp), lambda i: (0, 0))],
        out_specs=[pl.BlockSpec((tile_m, cp), lambda i: (i, 0)),
                   pl.BlockSpec((2, cp), lambda i: (0, 0))],
        out_shape=(jax.ShapeDtypeStruct((mp, cp), jnp.float32),
                   jax.ShapeDtypeStruct((2, cp), jnp.float32)),
        compiler_params=pltpu.CompilerParams(
            dimension_semantics=("arbitrary",),       # stats accumulator
            vmem_limit_bytes=VMEM_LIMIT),
    )(lhs, w_pad)

    # ---- fold stats + affine into scale/shift (tiny XLA ops, fused in jit) -
    inv_m = 1.0 / float(m_true)
    mean = stats[0] * inv_m
    var = jnp.maximum(stats[1] * inv_m - mean * mean, 0.0)
    inv_std = jax.lax.rsqrt(var + eps)
    scale = gamma_pad * inv_std
    shift = beta_pad - mean * scale
    ss = jnp.stack([scale, shift], axis=0)            # (2, Cp) f32

    # ---- pass B: normalize + activation (+ residual) ----------------------
    if residual is None:
        kernel = functools.partial(_bn_act_kernel, neg_slope=neg_slope,
                                   extra_relu=extra_relu)
        inputs = (y, ss)
        in_specs = [pl.BlockSpec((tile_m, cp), lambda i: (i, 0)),
                    pl.BlockSpec((2, cp), lambda i: (0, 0))]
    else:
        kernel = functools.partial(_bn_act_residual_kernel,
                                   neg_slope=neg_slope)
        inputs = (y, ss, residual.astype(jnp.float32))
        in_specs = [pl.BlockSpec((tile_m, cp), lambda i: (i, 0)),
                    pl.BlockSpec((2, cp), lambda i: (0, 0)),
                    pl.BlockSpec((tile_m, cp), lambda i: (i, 0))]

    out = pl.pallas_call(
        kernel,
        grid=(n_tiles,),
        in_specs=in_specs,
        out_specs=pl.BlockSpec((tile_m, cp), lambda i: (i, 0)),
        out_shape=jax.ShapeDtypeStruct((mp, cp), out_dtype),
        compiler_params=pltpu.CompilerParams(
            dimension_semantics=("parallel",),        # embarrassingly parallel
            vmem_limit_bytes=VMEM_LIMIT),
    )(*inputs)
    return out


def _pad_rows(a, mp):
    m = a.shape[0]
    return a if m == mp else jnp.pad(a, ((0, mp - m), (0, 0)))


# --------------------------------------------------------------------------
# Bottleneck forward
# --------------------------------------------------------------------------
def bottleneck_forward(x, params, *, stride=1, tile_m=TILE_M, eps=EPS,
                       neg_slope=NEG_SLOPE):
    w1, g1, b1 = params["w1"], params["g1"], params["b1"]
    w2, g2, b2 = params["w2"], params["g2"], params["b2"]
    w3, g3, b3 = params["w3"], params["g3"], params["b3"]

    N, cin, D, H, W = x.shape
    planes = w1.shape[0]
    cout3 = w3.shape[0]                               # planes * 4
    assert cout3 == cin and stride == 1, "downsample=None residual path"
    cp = _round_up(max(planes, cout3), LANES)         # lane-dense channel width

    # ---------------- layer 1: 1x1x1 conv (pure channel matmul) ------------
    m1 = N * D * H * W
    m1p = _round_up(m1, tile_m)
    x_cl = jnp.transpose(x, (0, 2, 3, 4, 1)).reshape(m1, cin).astype(jnp.float32)
    lhs1 = _pad_rows(x_cl, m1p)
    w1p = jnp.zeros((cin, cp), jnp.float32).at[:, :planes].set(
        w1.reshape(planes, cin).T)
    g1p = jnp.zeros((cp,), jnp.float32).at[:planes].set(g1)
    b1p = jnp.zeros((cp,), jnp.float32).at[:planes].set(b1)
    a1 = _matmul_bn_act(lhs1, w1p, g1p, b1p, m_true=m1, tile_m=tile_m, eps=eps,
                        neg_slope=neg_slope, extra_relu=True,
                        out_dtype=jnp.bfloat16)       # (m1p, cp) bf16

    # ---------------- layer 2: 3x3x3 conv, stride, padding=1 ---------------
    a1_sp = a1[:m1, :planes].reshape(N, D, H, W, planes)
    xp = jnp.pad(a1_sp, ((0, 0), (1, 1), (1, 1), (1, 1), (0, 0)))
    Do = (D + 2 - 3) // stride + 1
    Ho = (H + 2 - 3) // stride + 1
    Wo = (W + 2 - 3) // stride + 1
    slabs = []
    for a in range(3):
        for b in range(3):
            for c in range(3):
                slabs.append(xp[:, a:a + stride * Do:stride,
                                   b:b + stride * Ho:stride,
                                   c:c + stride * Wo:stride, :])
    patches = jnp.stack(slabs, axis=-1)               # (N,Do,Ho,Wo,planes,27)
    m2 = N * Do * Ho * Wo
    k2 = planes * 27
    k2p = _round_up(k2, LANES)
    m2p = _round_up(m2, tile_m)
    patches = patches.reshape(m2, k2)
    patches = jnp.pad(patches, ((0, m2p - m2), (0, k2p - k2)))
    w2p = jnp.zeros((k2p, cp), jnp.float32).at[:k2, :planes].set(
        w2.reshape(planes, k2).T)
    g2p = jnp.zeros((cp,), jnp.float32).at[:planes].set(g2)
    b2p = jnp.zeros((cp,), jnp.float32).at[:planes].set(b2)
    a2 = _matmul_bn_act(patches, w2p, g2p, b2p, m_true=m2, tile_m=tile_m,
                        eps=eps, neg_slope=neg_slope, extra_relu=True,
                        out_dtype=jnp.bfloat16)       # (m2p, cp) bf16

    # ---------------- layer 3: 1x1x1 conv + residual + ReLU ----------------
    # LHS reuses the lane-padded layer-2 activation directly (padded channels
    # are zero, matching zero weight rows) -> already 128-lane dense.
    w3p = jnp.zeros((cp, cp), jnp.float32).at[:planes, :cout3].set(
        w3.reshape(cout3, planes).T)
    g3p = jnp.zeros((cp,), jnp.float32).at[:cout3].set(g3)
    b3p = jnp.zeros((cp,), jnp.float32).at[:cout3].set(b3)
    res = jnp.zeros((m2p, cp), jnp.float32).at[:m1, :cin].set(x_cl)
    out = _matmul_bn_act(a2, w3p, g3p, b3p, m_true=m2, tile_m=tile_m, eps=eps,
                         neg_slope=neg_slope, extra_relu=False,
                         residual=res, out_dtype=jnp.float32)

    out = out[:m2, :cout3].reshape(N, Do, Ho, Wo, cout3)
    return jnp.transpose(out, (0, 4, 1, 2, 3))        # NCDHW


# --------------------------------------------------------------------------
# Plain-JAX f32 reference (PyTorch semantics)
# --------------------------------------------------------------------------
def _reference(x, p, *, stride=1, eps=EPS, neg_slope=NEG_SLOPE):
    def conv(h, w, s, pad):
        return jax.lax.conv_general_dilated(
            h, w, window_strides=(s,) * 3, padding=[(pad, pad)] * 3,
            dimension_numbers=("NCDHW", "OIDHW", "NCDHW"))

    def bn_act(h, g, b, extra_relu):
        mean = jnp.mean(h, axis=(0, 2, 3, 4), keepdims=True)
        var = jnp.mean((h - mean) ** 2, axis=(0, 2, 3, 4), keepdims=True)
        z = (h - mean) * jax.lax.rsqrt(var + eps)
        z = g.reshape(1, -1, 1, 1, 1) * z + b.reshape(1, -1, 1, 1, 1)
        z = jnp.where(z >= 0, z, neg_slope * z)
        if extra_relu:
            z = jnp.maximum(z, 0.0)
        return z

    h = bn_act(conv(x, p["w1"], 1, 0), p["g1"], p["b1"], True)
    h = bn_act(conv(h, p["w2"], stride, 1), p["g2"], p["b2"], True)
    h = bn_act(conv(h, p["w3"], 1, 0), p["g3"], p["b3"], False)
    h = h + x                                          # downsample is None
    return jnp.maximum(h, 0.0)


if __name__ == "__main__":
    N, planes, D = 2, 4, 8
    inplanes = planes * 4          # required for the identity residual path
    stride = 1

    key = jax.random.PRNGKey(0)
    ks = jax.random.split(key, 10)
    x = jax.random.normal(ks[0], (N, inplanes, D, D, D), dtype=jnp.float32)

    def conv_w(k, cout, cin, ksz):
        fan_in = cin * ksz ** 3
        bound = 1.0 / (fan_in ** 0.5)
        return jax.random.uniform(k, (cout, cin, ksz, ksz, ksz),
                                  minval=-bound, maxval=bound,
                                  dtype=jnp.float32)

    params = {
        "w1": conv_w(ks[1], planes, inplanes, 1),
        "g1": 1.0 + 0.1 * jnp.abs(jax.random.normal(ks[2], (planes,), jnp.float32)),
        "b1": 0.1 * jax.random.normal(ks[3], (planes,), jnp.float32),
        "w2": conv_w(ks[4], planes, planes, 3),
        "g2": 1.0 + 0.1 * jnp.abs(jax.random.normal(ks[5], (planes,), jnp.float32)),
        "b2": 0.1 * jax.random.normal(ks[6], (planes,), jnp.float32),
        "w3": conv_w(ks[7], planes * 4, planes, 1),
        "g3": 1.0 + 0.1 * jnp.abs(jax.random.normal(ks[8], (planes * 4,), jnp.float32)),
        "b3": 0.1 * jax.random.normal(ks[9], (planes * 4,), jnp.float32),
    }

    fwd = jax.jit(functools.partial(bottleneck_forward, stride=stride,
                                    tile_m=TILE_M))
    out = jax.block_until_ready(fwd(x, params))

    ref = _reference(x, params, stride=stride)
    assert out.shape == ref.shape == (N, planes * 4, D, D, D), out.shape
    max_err = float(jnp.max(jnp.abs(out - ref)))
    # bf16 MXU operands vs f32 reference -> bf16-level tolerance.
    assert jnp.allclose(out, ref, atol=5e-2, rtol=5e-2), max_err

    print("KERNEL_OK")
</pallas_src>

<mosaic_0001>
module attributes {stable_mosaic.version = 11 : i64} {
  func.func @_bn_act_kernel(%arg0: i32, %arg1: memref<256x128xf32, #tpu.memory_space<vmem>>, %arg2: memref<2x128xf32, #tpu.memory_space<vmem>>, %arg3: memref<256x128xbf16, #tpu.memory_space<vmem>>) attributes {dimension_semantics = [#tpu.dimension_semantics<parallel>], iteration_bounds = array<i64: 4>, scalar_prefetch = 0 : i64, scratch_operands = 0 : i64, tpu.core_type = #tpu.core_type<tc>, window_params = [{transform_indices = @transform_0, window_bounds = array<i64: 256, 128>}, {pipeline_mode = #tpu.pipeline_mode<synchronous>, transform_indices = @transform_1, window_bounds = array<i64: 2, 128>}, {transform_indices = @transform_2, window_bounds = array<i64: 256, 128>}]} {
    %c0 = arith.constant 0 : index
    %c0_0 = arith.constant 0 : index
    %0 = vector.load %arg1[%c0, %c0_0] : memref<256x128xf32, #tpu.memory_space<vmem>>, vector<256x128xf32>
    %c0_1 = arith.constant 0 : index
    %c0_2 = arith.constant 0 : index
    %1 = vector.load %arg2[%c0_1, %c0_2] : memref<2x128xf32, #tpu.memory_space<vmem>>, vector<1x128xf32>
    %2 = vector.broadcast %1 : vector<1x128xf32> to vector<256x128xf32>
    %3 = arith.mulf %0, %2 : vector<256x128xf32>
    %c1 = arith.constant 1 : index
    %c0_3 = arith.constant 0 : index
    %4 = vector.load %arg2[%c1, %c0_3] : memref<2x128xf32, #tpu.memory_space<vmem>>, vector<1x128xf32>
    %5 = vector.broadcast %4 : vector<1x128xf32> to vector<256x128xf32>
    %6 = arith.addf %3, %5 : vector<256x128xf32>
    %cst = arith.constant 0.000000e+00 : f32
    %7 = vector.broadcast %cst : f32 to vector<256x128xf32>
    %8 = arith.cmpf oge, %6, %7 : vector<256x128xf32>
    %cst_4 = arith.constant 0.00999999977 : f32
    %9 = vector.broadcast %cst_4 : f32 to vector<256x128xf32>
    %10 = arith.mulf %9, %6 : vector<256x128xf32>
    %11 = arith.select %8, %6, %10 : vector<256x128xi1>, vector<256x128xf32>
    %cst_5 = arith.constant 0.000000e+00 : f32
    %12 = vector.broadcast %cst_5 : f32 to vector<256x128xf32>
    %13 = arith.maximumf %11, %12 : vector<256x128xf32>
    %14 = arith.truncf %13 : vector<256x128xf32> to vector<256x128xbf16>
    %c0_6 = arith.constant 0 : index
    %c0_7 = arith.constant 0 : index
    %15 = vector.load %arg3[%c0_6, %c0_7] : memref<256x128xbf16, #tpu.memory_space<vmem>>, vector<256x128xbf16>
    tpu.vector_store %arg3[%c0_6, %c0_7], %14 {strides = array<i32>} : memref<256x128xbf16, #tpu.memory_space<vmem>>, vector<256x128xbf16>,
    return
  }
  func.func @transform_0(%arg0: i32) -> (i32, i32) {
    %c0_i32 = arith.constant 0 : i32
    %c0_i32_0 = arith.constant 0 : i32
    return %arg0, %c0_i32 : i32, i32
  }
  func.func @transform_1(%arg0: i32) -> (i32, i32) {
    %c0_i32 = arith.constant 0 : i32
    %c0_i32_0 = arith.constant 0 : i32
    %c0_i32_1 = arith.constant 0 : i32
    return %c0_i32, %c0_i32_0 : i32, i32
  }
  func.func @transform_2(%arg0: i32) -> (i32, i32) {
    %c0_i32 = arith.constant 0 : i32
    %c0_i32_0 = arith.constant 0 : i32
    return %arg0, %c0_i32 : i32, i32
  }
}

module attributes {stable_mosaic.version = 11 : i64} {
  func.func @_matmul_stats_kernel(%arg0: i32, %arg1: memref<256x16xbf16, #tpu.memory_space<vmem>>, %arg2: memref<16x128xbf16, #tpu.memory_space<vmem>>, %arg3: memref<256x128xf32, #tpu.memory_space<vmem>>, %arg4: memref<2x128xf32, #tpu.memory_space<vmem>>) attributes {dimension_semantics = [#tpu.dimension_semantics<arbitrary>], iteration_bounds = array<i64: 4>, scalar_prefetch = 0 : i64, scratch_operands = 0 : i64, tpu.core_type = #tpu.core_type<tc>, window_params = [{transform_indices = @transform_0, window_bounds = array<i64: 256, 16>}, {pipeline_mode = #tpu.pipeline_mode<synchronous>, transform_indices = @transform_1, window_bounds = array<i64: 16, 128>}, {transform_indices = @transform_2, window_bounds = array<i64: 256, 128>}, {pipeline_mode = #tpu.pipeline_mode<synchronous>, transform_indices = @transform_3, window_bounds = array<i64: 2, 128>}]} {
    %c0_i32 = arith.constant 0 : i32
    %0 = arith.cmpi eq, %arg0, %c0_i32 : i32
    %1 = arith.extui %0 : i1 to i32
    %c0_i32_0 = arith.constant 0 : i32
    %2 = arith.cmpi ne, %1, %c0_i32_0 : i32
    scf.if %2 {
      %cst_13 = arith.constant 0.000000e+00 : f32
      %26 = vector.broadcast %cst_13 : f32 to vector<2x128xf32>
      %c0_14 = arith.constant 0 : index
      %c0_15 = arith.constant 0 : index
      %27 = vector.load %arg4[%c0_14, %c0_15] : memref<2x128xf32, #tpu.memory_space<vmem>>, vector<2x128xf32>
      tpu.vector_store %arg4[%c0_14, %c0_15], %26 {strides = array<i32>} : memref<2x128xf32, #tpu.memory_space<vmem>>, vector<2x128xf32>,
    } else {
    }
    %c0 = arith.constant 0 : index
    %c0_1 = arith.constant 0 : index
    %3 = vector.load %arg1[%c0, %c0_1] : memref<256x16xbf16, #tpu.memory_space<vmem>>, vector<256x16xbf16>
    %c0_2 = arith.constant 0 : index
    %c0_3 = arith.constant 0 : index
    %4 = vector.load %arg2[%c0_2, %c0_3] : memref<16x128xbf16, #tpu.memory_space<vmem>>, vector<16x128xbf16>
    %cst = arith.constant dense<0.000000e+00> : vector<256x128xf32>
    %5 = tpu.matmul %3, %4, %cst {dimension_numbers = #tpu.dot_dimension_numbers<[1], [0], [0], [1], [0, 0, 1, 1], [], []>} : vector<256x16xbf16>, vector<16x128xbf16>, vector<256x128xf32> -> vector<256x128xf32>
    %c0_4 = arith.constant 0 : index
    %c0_5 = arith.constant 0 : index
    %6 = vector.load %arg3[%c0_4, %c0_5] : memref<256x128xf32, #tpu.memory_space<vmem>>, vector<256x128xf32>
    tpu.vector_store %arg3[%c0_4, %c0_5], %5 {strides = array<i32>} : memref<256x128xf32, #tpu.memory_space<vmem>>, vector<256x128xf32>,
    %7 = tpu.iota {dimensions = array<i32: 0>} : vector<256x1xi32>
    %c256_i32 = arith.constant 256 : i32
    %8 = arith.muli %arg0, %c256_i32 : i32
    %9 = vector.broadcast %8 : i32 to vector<256x1xi32>
    %10 = arith.addi %7, %9 : vector<256x1xi32>
    %c1024_i32 = arith.constant 1024 : i32
    %11 = vector.broadcast %c1024_i32 : i32 to vector<256x1xi32>
    %12 = arith.cmpi slt, %10, %11 : vector<256x1xi32>
    %cst_6 = arith.constant 0.000000e+00 : f32
    %13 = vector.shape_cast %12 : vector<256x1xi1> to vector<256x1xi1>
    %14 = vector.broadcast %13 : vector<256x1xi1> to vector<256x128xi1>
    %15 = vector.broadcast %cst_6 : f32 to vector<256x128xf32>
    %16 = arith.select %14, %5, %15 : vector<256x128xi1>, vector<256x128xf32>
    %cst_7 = arith.constant dense<0.000000e+00> : vector<128xf32>
    %17 = vector.multi_reduction <add>, %16, %cst_7 [0] : vector<256x128xf32> to vector<128xf32>
    %18 = vector.shape_cast %17 : vector<128xf32> to vector<1x128xf32>
    %19 = arith.mulf %16, %16 : vector<256x128xf32>
    %cst_8 = arith.constant dense<0.000000e+00> : vector<128xf32>
    %20 = vector.multi_reduction <add>, %19, %cst_8 [0] : vector<256x128xf32> to vector<128xf32>
    %21 = vector.shape_cast %20 : vector<128xf32> to vector<1x128xf32>
    %c0_9 = arith.constant 0 : index
    %c0_10 = arith.constant 0 : index
    %22 = vector.load %arg4[%c0_9, %c0_10] : memref<2x128xf32, #tpu.memory_space<vmem>>, vector<2x128xf32>
    %23 = tpu.concatenate %18, %21 in 0 : vector<1x128xf32>, vector<1x128xf32> -> vector<2x128xf32>
    %24 = arith.addf %22, %23 : vector<2x128xf32>
    %c0_11 = arith.constant 0 : index
    %c0_12 = arith.constant 0 : index
    %25 = vector.load %arg4[%c0_11, %c0_12] : memref<2x128xf32, #tpu.memory_space<vmem>>, vector<2x128xf32>
    tpu.vector_store %arg4[%c0_11, %c0_12], %24 {strides = array<i32>} : memref<2x128xf32, #tpu.memory_space<vmem>>, vector<2x128xf32>,
    return
  }
  func.func @transform_0(%arg0: i32) -> (i32, i32) {
    %c0_i32 = arith.constant 0 : i32
    %c0_i32_0 = arith.constant 0 : i32
    return %arg0, %c0_i32 : i32, i32
  }
  func.func @transform_1(%arg0: i32) -> (i32, i32) {
    %c0_i32 = arith.constant 0 : i32
    %c0_i32_0 = arith.constant 0 : i32
    %c0_i32_1 = arith.constant 0 : i32
    return %c0_i32, %c0_i32_0 : i32, i32
  }
  func.func @transform_2(%arg0: i32) -> (i32, i32) {
    %c0_i32 = arith.constant 0 : i32
    %c0_i32_0 = arith.constant 0 : i32
    return %arg0, %c0_i32 : i32, i32
  }
  func.func @transform_3(%arg0: i32) -> (i32, i32) {
    %c0_i32 = arith.constant 0 : i32
    %c0_i32_0 = arith.constant 0 : i32
    %c0_i32_1 = arith.constant 0 : i32
    return %c0_i32, %c0_i32_0 : i32, i32
  }
}

module attributes {stable_mosaic.version = 11 : i64} {
  func.func @_matmul_stats_kernel(%arg0: i32, %arg1: memref<256x128xbf16, #tpu.memory_space<vmem>>, %arg2: memref<128x128xbf16, #tpu.memory_space<vmem>>, %arg3: memref<256x128xf32, #tpu.memory_space<vmem>>, %arg4: memref<2x128xf32, #tpu.memory_space<vmem>>) attributes {dimension_semantics = [#tpu.dimension_semantics<arbitrary>], iteration_bounds = array<i64: 4>, scalar_prefetch = 0 : i64, scratch_operands = 0 : i64, tpu.core_type = #tpu.core_type<tc>, window_params = [{transform_indices = @transform_0, window_bounds = array<i64: 256, 128>}, {pipeline_mode = #tpu.pipeline_mode<synchronous>, transform_indices = @transform_1, window_bounds = array<i64: 128, 128>}, {transform_indices = @transform_2, window_bounds = array<i64: 256, 128>}, {pipeline_mode = #tpu.pipeline_mode<synchronous>, transform_indices = @transform_3, window_bounds = array<i64: 2, 128>}]} {
    %c0_i32 = arith.constant 0 : i32
    %0 = arith.cmpi eq, %arg0, %c0_i32 : i32
    %1 = arith.extui %0 : i1 to i32
    %c0_i32_0 = arith.constant 0 : i32
    %2 = arith.cmpi ne, %1, %c0_i32_0 : i32
    scf.if %2 {
      %cst_13 = arith.constant 0.000000e+00 : f32
      %26 = vector.broadcast %cst_13 : f32 to vector<2x128xf32>
      %c0_14 = arith.constant 0 : index
      %c0_15 = arith.constant 0 : index
      %27 = vector.load %arg4[%c0_14, %c0_15] : memref<2x128xf32, #tpu.memory_space<vmem>>, vector<2x128xf32>
      tpu.vector_store %arg4[%c0_14, %c0_15], %26 {strides = array<i32>} : memref<2x128xf32, #tpu.memory_space<vmem>>, vector<2x128xf32>,
    } else {
    }
    %c0 = arith.constant 0 : index
    %c0_1 = arith.constant 0 : index
    %3 = vector.load %arg1[%c0, %c0_1] : memref<256x128xbf16, #tpu.memory_space<vmem>>, vector<256x128xbf16>
    %c0_2 = arith.constant 0 : index
    %c0_3 = arith.constant 0 : index
    %4 = vector.load %arg2[%c0_2, %c0_3] : memref<128x128xbf16, #tpu.memory_space<vmem>>, vector<128x128xbf16>
    %cst = arith.constant dense<0.000000e+00> : vector<256x128xf32>
    %5 = tpu.matmul %3, %4, %cst {dimension_numbers = #tpu.dot_dimension_numbers<[1], [0], [0], [1], [0, 0, 1, 1], [], []>} : vector<256x128xbf16>, vector<128x128xbf16>, vector<256x128xf32> -> vector<256x128xf32>
    %c0_4 = arith.constant 0 : index
    %c0_5 = arith.constant 0 : index
    %6 = vector.load %arg3[%c0_4, %c0_5] : memref<256x128xf32, #tpu.memory_space<vmem>>, vector<256x128xf32>
    tpu.vector_store %arg3[%c0_4, %c0_5], %5 {strides = array<i32>} : memref<256x128xf32, #tpu.memory_space<vmem>>, vector<256x128xf32>,
    %7 = tpu.iota {dimensions = array<i32: 0>} : vector<256x1xi32>
    %c256_i32 = arith.constant 256 : i32
    %8 = arith.muli %arg0, %c256_i32 : i32
    %9 = vector.broadcast %8 : i32 to vector<256x1xi32>
    %10 = arith.addi %7, %9 : vector<256x1xi32>
    %c1024_i32 = arith.constant 1024 : i32
    %11 = vector.broadcast %c1024_i32 : i32 to vector<256x1xi32>
    %12 = arith.cmpi slt, %10, %11 : vector<256x1xi32>
    %cst_6 = arith.constant 0.000000e+00 : f32
    %13 = vector.shape_cast %12 : vector<256x1xi1> to vector<256x1xi1>
    %14 = vector.broadcast %13 : vector<256x1xi1> to vector<256x128xi1>
    %15 = vector.broadcast %cst_6 : f32 to vector<256x128xf32>
    %16 = arith.select %14, %5, %15 : vector<256x128xi1>, vector<256x128xf32>
    %cst_7 = arith.constant dense<0.000000e+00> : vector<128xf32>
    %17 = vector.multi_reduction <add>, %16, %cst_7 [0] : vector<256x128xf32> to vector<128xf32>
    %18 = vector.shape_cast %17 : vector<128xf32> to vector<1x128xf32>
    %19 = arith.mulf %16, %16 : vector<256x128xf32>
    %cst_8 = arith.constant dense<0.000000e+00> : vector<128xf32>
    %20 = vector.multi_reduction <add>, %19, %cst_8 [0] : vector<256x128xf32> to vector<128xf32>
    %21 = vector.shape_cast %20 : vector<128xf32> to vector<1x128xf32>
    %c0_9 = arith.constant 0 : index
    %c0_10 = arith.constant 0 : index
    %22 = vector.load %arg4[%c0_9, %c0_10] : memref<2x128xf32, #tpu.memory_space<vmem>>, vector<2x128xf32>
    %23 = tpu.concatenate %18, %21 in 0 : vector<1x128xf32>, vector<1x128xf32> -> vector<2x128xf32>
    %24 = arith.addf %22, %23 : vector<2x128xf32>
    %c0_11 = arith.constant 0 : index
    %c0_12 = arith.constant 0 : index
    %25 = vector.load %arg4[%c0_11, %c0_12] : memref<2x128xf32, #tpu.memory_space<vmem>>, vector<2x128xf32>
    tpu.vector_store %arg4[%c0_11, %c0_12], %24 {strides = array<i32>} : memref<2x128xf32, #tpu.memory_space<vmem>>, vector<2x128xf32>,
    return
  }
  func.func @transform_0(%arg0: i32) -> (i32, i32) {
    %c0_i32 = arith.constant 0 : i32
    %c0_i32_0 = arith.constant 0 : i32
    return %arg0, %c0_i32 : i32, i32
  }
  func.func @transform_1(%arg0: i32) -> (i32, i32) {
    %c0_i32 = arith.constant 0 : i32
    %c0_i32_0 = arith.constant 0 : i32
    %c0_i32_1 = arith.constant 0 : i32
    return %c0_i32, %c0_i32_0 : i32, i32
  }
  func.func @transform_2(%arg0: i32) -> (i32, i32) {
    %c0_i32 = arith.constant 0 : i32
    %c0_i32_0 = arith.constant 0 : i32
    return %arg0, %c0_i32 : i32, i32
  }
  func.func @transform_3(%arg0: i32) -> (i32, i32) {
    %c0_i32 = arith.constant 0 : i32
    %c0_i32_0 = arith.constant 0 : i32
    %c0_i32_1 = arith.constant 0 : i32
    return %c0_i32, %c0_i32_0 : i32, i32
  }
}

module attributes {stable_mosaic.version = 11 : i64} {
  func.func @_bn_act_residual_kernel(%arg0: i32, %arg1: memref<256x128xf32, #tpu.memory_space<vmem>>, %arg2: memref<2x128xf32, #tpu.memory_space<vmem>>, %arg3: memref<256x128xf32, #tpu.memory_space<vmem>>, %arg4: memref<256x128xf32, #tpu.memory_space<vmem>>) attributes {dimension_semantics = [#tpu.dimension_semantics<parallel>], iteration_bounds = array<i64: 4>, scalar_prefetch = 0 : i64, scratch_operands = 0 : i64, tpu.core_type = #tpu.core_type<tc>, window_params = [{transform_indices = @transform_0, window_bounds = array<i64: 256, 128>}, {pipeline_mode = #tpu.pipeline_mode<synchronous>, transform_indices = @transform_1, window_bounds = array<i64: 2, 128>}, {transform_indices = @transform_2, window_bounds = array<i64: 256, 128>}, {transform_indices = @transform_3, window_bounds = array<i64: 256, 128>}]} {
    %c0 = arith.constant 0 : index
    %c0_0 = arith.constant 0 : index
    %0 = vector.load %arg1[%c0, %c0_0] : memref<256x128xf32, #tpu.memory_space<vmem>>, vector<256x128xf32>
    %c0_1 = arith.constant 0 : index
    %c0_2 = arith.constant 0 : index
    %1 = vector.load %arg2[%c0_1, %c0_2] : memref<2x128xf32, #tpu.memory_space<vmem>>, vector<1x128xf32>
    %2 = vector.broadcast %1 : vector<1x128xf32> to vector<256x128xf32>
    %3 = arith.mulf %0, %2 : vector<256x128xf32>
    %c1 = arith.constant 1 : index
    %c0_3 = arith.constant 0 : index
    %4 = vector.load %arg2[%c1, %c0_3] : memref<2x128xf32, #tpu.memory_space<vmem>>, vector<1x128xf32>
    %5 = vector.broadcast %4 : vector<1x128xf32> to vector<256x128xf32>
    %6 = arith.addf %3, %5 : vector<256x128xf32>
    %cst = arith.constant 0.000000e+00 : f32
    %7 = vector.broadcast %cst : f32 to vector<256x128xf32>
    %8 = arith.cmpf oge, %6, %7 : vector<256x128xf32>
    %cst_4 = arith.constant 0.00999999977 : f32
    %9 = vector.broadcast %cst_4 : f32 to vector<256x128xf32>
    %10 = arith.mulf %9, %6 : vector<256x128xf32>
    %11 = arith.select %8, %6, %10 : vector<256x128xi1>, vector<256x128xf32>
    %c0_5 = arith.constant 0 : index
    %c0_6 = arith.constant 0 : index
    %12 = vector.load %arg3[%c0_5, %c0_6] : memref<256x128xf32, #tpu.memory_space<vmem>>, vector<256x128xf32>
    %13 = arith.addf %11, %12 : vector<256x128xf32>
    %cst_7 = arith.constant 0.000000e+00 : f32
    %14 = vector.broadcast %cst_7 : f32 to vector<256x128xf32>
    %15 = arith.maximumf %13, %14 : vector<256x128xf32>
    %c0_8 = arith.constant 0 : index
    %c0_9 = arith.constant 0 : index
    %16 = vector.load %arg4[%c0_8, %c0_9] : memref<256x128xf32, #tpu.memory_space<vmem>>, vector<256x128xf32>
    tpu.vector_store %arg4[%c0_8, %c0_9], %15 {strides = array<i32>} : memref<256x128xf32, #tpu.memory_space<vmem>>, vector<256x128xf32>,
    return
  }
  func.func @transform_0(%arg0: i32) -> (i32, i32) {
    %c0_i32 = arith.constant 0 : i32
    %c0_i32_0 = arith.constant 0 : i32
    return %arg0, %c0_i32 : i32, i32
  }
  func.func @transform_1(%arg0: i32) -> (i32, i32) {
    %c0_i32 = arith.constant 0 : i32
    %c0_i32_0 = arith.constant 0 : i32
    %c0_i32_1 = arith.constant 0 : i32
    return %c0_i32, %c0_i32_0 : i32, i32
  }
  func.func @transform_2(%arg0: i32) -> (i32, i32) {
    %c0_i32 = arith.constant 0 : i32
    %c0_i32_0 = arith.constant 0 : i32
    return %arg0, %c0_i32 : i32, i32
  }
  func.func @transform_3(%arg0: i32) -> (i32, i32) {
    %c0_i32 = arith.constant 0 : i32
    %c0_i32_0 = arith.constant 0 : i32
    return %arg0, %c0_i32 : i32, i32
  }
}

</mosaic_0001>

<bundles_post_ra>
// kernel: bottleneck_forward.7
= control target key start
LH: loop header
LB: loop body
LE: loop exit
PB: predicated region body
PF: predicated region fallthrough
CT: control target
= control target key end

     0   :  { %s800_s9 = smov 0   ;;  %s949_s0 = inlined_call_operand.vmem [shape: f32[1024,128], index: 0, kind: input, shape index: {}]   ;;  %s950_s1 = inlined_call_operand.vmem [shape: f32[2,128], index: 1, kind: input, shape index: {}]   ;;  %s951_s2 = inlined_call_operand.vmem [shape: bf16[1024,128], index: 2, kind: output, shape index: {}]  }
   0x1 LB: > { %s597_s10 = sadd.s32 4294967295, %s783_s9   ;;  %p601_p0 = scmp.ge.s32.totalorder %s783_s9, 1  ;;  %s783_s9 = sphi %s800_s9, %s12_s9  }
   0x2   : > { %p113_p1 = scmp.lt.s32.totalorder %s783_s9, 5 }
   0x4   : > { %p114_p2 = pnand %p601_p0, %p113_p1 }
   0x5   : > { %s602_s11 = sshll.u32 (!%p114_p2), %s597_s10, 5  ;;  %v814_v0 = vld [vmem:[%s950_s1] ss:$0 sm:$0xff] (!%p114_p2)  ;;  %v824_v1 = vld [vmem:[%s950_s1 + $0x1] ss:$0 sm:$0xff] (!%p114_p2) }
   0x6   : > { %117 = sbr.rel (%p114_p2) target bundleno = 75 (0x4b), region = 28  ;;  %p136_p3 = scmp.lt.s32.totalorder (!%p114_p2), %s602_s11, 127 }
   0xd   : > { %s953_s11 = smov (!%p136_p3, %s602_s11), 127 }
   0xe   : > { %s603_s12 = sshll.u32 %s953_s11, 3  ;;  %s605_s20 = sshll.u32 %s953_s11, 2 }
   0xf   : > { %s819_s17 = scalar_lea.vmem %s949_s0, %s603_s12  ;;  %s854_s23 = scalar_lea.vmem %s951_s2, %s605_s20 }
  0x10   : > { %v147_v2 = vld [vmem:[%s819_s17] sm:$0xff]  ;;  %v148_v3 = vld [vmem:[%s819_s17 + $0x8] sm:$0xff]  ;;  %v149_v4 = vld [vmem:[%s819_s17 + $0x10] sm:$0xff] }
  0x11   : > { %v184_v5 = vmul.f32 %v814_v0, %v147_v2  ;;  %v185_v6 = vmul.f32 %v814_v0, %v148_v3  ;;  %v150_v7 = vld [vmem:[%s819_s17 + $0x18] sm:$0xff]  ;;  %v186_v8 = vmul.f32 %v814_v0, %v149_v4  ;;  %v151_v9 = vld [vmem:[%s819_s17 + $0x20] sm:$0xff]  ;;  %v152_v10 = vld [vmem:[%s819_s17 + $0x28] sm:$0xff] }
  0x12   : > { %v187_v11 = vmul.f32 %v814_v0, %v150_v7  ;;  %v188_v12 = vmul.f32 %v814_v0, %v151_v9  ;;  %v189_v13 = vmul.f32 %v814_v0, %v152_v10  ;;  %v153_v14 = vld [vmem:[%s819_s17 + $0x30] sm:$0xff]  ;;  %v154_v15 = vld [vmem:[%s819_s17 + $0x38] sm:$0xff]  ;;  %v155_v30 = vld [vmem:[%s819_s17 + $0x40] sm:$0xff] }
  0x13   : > { %v221_v16 = vadd.f32 %v824_v1, %v184_v5  ;;  %v222_v17 = vadd.f32 %v824_v1, %v185_v6  ;;  %v223_v18 = vadd.f32 %v824_v1, %v186_v8  ;;  %v190_v19 = vmul.f32 %v814_v0, %v153_v14  ;;  %v156_v35 = vld [vmem:[%s819_s17 + $0x48] sm:$0xff]  ;;  %v157_v48 = vld [vmem:[%s819_s17 + $0x50] sm:$0xff]  ;;  %v158_v49 = vld [vmem:[%s819_s17 + $0x58] sm:$0xff] }
  0x14   : > { %v224_v20 = vadd.f32 %v824_v1, %v187_v11  ;;  %v225_v21 = vadd.f32 %v824_v1, %v188_v12  ;;  %v226_v22 = vadd.f32 %v824_v1, %v189_v13  ;;  %v191_v23 = vmul.f32 %v814_v0, %v154_v15  ;;  %v159_v50 = vld [vmem:[%s819_s17 + $0x60] sm:$0xff]  ;;  %v160_v60 = vld [vmem:[%s819_s17 + $0x68] sm:$0xff]  ;;  %v161_v2 = vld [vmem:[%s819_s17 + $0x70] sm:$0xff] }
  0x15   : > { %vm253_vm0 = vcmp.ge.f32.partialorder %v221_v16, 0.0  ;;  %vm254_vm1 = vcmp.ge.f32.partialorder %v222_v17, 0.0  ;;  %v285_v24 = vmul.f32 0.01, %v221_v16  ;;  %v286_v25 = vmul.f32 0.01, %v222_v17 }
  0x16   : > { %vm255_vm2 = vcmp.ge.f32.partialorder %v223_v18, 0.0  ;;  %vm256_vm3 = vcmp.ge.f32.partialorder %v224_v20, 0.0  ;;  %v287_v26 = vmul.f32 0.01, %v223_v18  ;;  %v288_v27 = vmul.f32 0.01, %v224_v20 }
  0x17   : > { %v317_v28 = vsel %vm253_vm0, %v221_v16, %v285_v24  ;;  %v318_v29 = vsel %vm254_vm1, %v222_v17, %v286_v25  ;;  %vm257_vm4 = vcmp.ge.f32.partialorder %v225_v21, 0.0  ;;  %vm258_vm5 = vcmp.ge.f32.partialorder %v226_v22, 0.0  ;;  %v162_v14 = vld [vmem:[%s819_s17 + $0x78] sm:$0xff] }
  0x18   : > { %v349_v31 = vmax.f32 %v317_v28, 0.0  ;;  %v350_v32 = vmax.f32 %v318_v29, 0.0  ;;  %v319_v33 = vsel %vm255_vm2, %v223_v18, %v287_v26  ;;  %v320_v34 = vsel %vm256_vm3, %v224_v20, %v288_v27 }
  0x19   : > { %v351_v36 = vmax.f32 %v319_v33, 0.0  ;;  %v352_v37 = vmax.f32 %v320_v34, 0.0  ;;  %v289_v38 = vmul.f32 0.01, %v225_v21  ;;  %v290_v39 = vmul.f32 0.01, %v226_v22 }
  0x1a   : > { %v677_v40 = vpack.c.bf16 %v350_v32, %v349_v31  ;;  %v227_v41 = vadd.f32 %v824_v1, %v190_v19  ;;  %v228_v42 = vadd.f32 %v824_v1, %v191_v23  ;;  %v192_v43 = vmul.f32 %v814_v0, %v155_v30  ;;  %v163_v32 = vld [vmem:[%s819_s17 + $0x80] sm:$0xff]  ;;  %v164_v33 = vld [vmem:[%s819_s17 + $0x88] sm:$0xff]  ;;  %v165_v34 = vld [vmem:[%s819_s17 + $0x90] sm:$0xff] }
  0x1b   : > { %v682_v44 = vpack.c.bf16 %v352_v37, %v351_v36  ;;  %v321_v45 = vsel %vm257_vm4, %v225_v21, %v289_v38  ;;  %v322_v46 = vsel %vm258_vm5, %v226_v22, %v290_v39  ;;  %v193_v47 = vmul.f32 %v814_v0, %v156_v35  ;;  %v166_v38 = vld [vmem:[%s819_s17 + $0x98] sm:$0xff] }
  0x1c   : > { %678 = vst [vmem:[%s854_s23] sm:$0xff] %v677_v40   ;;  %v353_v51 = vmax.f32 %v321_v45, 0.0  ;;  %v354_v52 = vmax.f32 %v322_v46, 0.0  ;;  %vm259_vm6 = vcmp.ge.f32.partialorder %v227_v41, 0.0  ;;  %vm260_vm7 = vcmp.ge.f32.partialorder %v228_v42, 0.0  ;;  %v167_v46 = vld [vmem:[%s819_s17 + $0xa0] sm:$0xff] }
  0x1d   : > { %754 = vst [vmem:[%s854_s23 + $0x8] sm:$0xff] %v682_v44   ;;  %v291_v53 = vmul.f32 0.01, %v227_v41  ;;  %v292_v54 = vmul.f32 0.01, %v228_v42  ;;  %v229_v55 = vadd.f32 %v824_v1, %v192_v43  ;;  %v230_v56 = vadd.f32 %v824_v1, %v193_v47  ;;  %v168_v47 = vld [vmem:[%s819_s17 + $0xa8] sm:$0xff] }
  0x1e   : > { %v687_v57 = vpack.c.bf16 %v354_v52, %v353_v51  ;;  %v194_v58 = vmul.f32 %v814_v0, %v157_v48  ;;  %v195_v59 = vmul.f32 %v814_v0, %v158_v49  ;;  %v196_v61 = vmul.f32 %v814_v0, %v159_v50  ;;  %v169_v48 = vld [vmem:[%s819_s17 + $0xb0] sm:$0xff] }
  0x1f   : > { %v323_v62 = vsel %vm259_vm6, %v227_v41, %v291_v53  ;;  %v324_v63 = vsel %vm260_vm7, %v228_v42, %v292_v54  ;;  %vm261_vm8 = vcmp.ge.f32.partialorder %v229_v55, 0.0  ;;  %vm262_vm9 = vcmp.ge.f32.partialorder %v230_v56, 0.0 }
  0x20   : > { %755 = vst [vmem:[%s854_s23 + $0x10] sm:$0xff] %v687_v57   ;;  %v355_v3 = vmax.f32 %v323_v62, 0.0  ;;  %v356_v4 = vmax.f32 %v324_v63, 0.0  ;;  %v293_v5 = vmul.f32 0.01, %v229_v55  ;;  %v231_v7 = vadd.f32 %v824_v1, %v194_v58  ;;  %v170_v63 = vld [vmem:[%s819_s17 + $0xb8] sm:$0xff] }
  0x21   : > { %v294_v6 = vmul.f32 0.01, %v230_v56  ;;  %v232_v8 = vadd.f32 %v824_v1, %v195_v59  ;;  %v197_v9 = vmul.f32 %v814_v0, %v160_v60  ;;  %v233_v10 = vadd.f32 %v824_v1, %v196_v61 }
  0x22   : > { %v692_v11 = vpack.c.bf16 %v356_v4, %v355_v3  ;;  %v325_v12 = vsel %vm261_vm8, %v229_v55, %v293_v5  ;;  %v198_v15 = vmul.f32 %v814_v0, %v161_v2  ;;  %vm263_vm10 = vcmp.ge.f32.partialorder %v231_v7, 0.0 }
  0x23   : > { %v326_v13 = vsel %vm262_vm9, %v230_v56, %v294_v6  ;;  %v357_v16 = vmax.f32 %v325_v12, 0.0  ;;  %vm264_vm11 = vcmp.ge.f32.partialorder %v232_v8, 0.0  ;;  %v295_v18 = vmul.f32 0.01, %v231_v7  ;;  %v171_v12 = vld [vmem:[%s819_s17 + $0xc0] sm:$0xff] }
  0x24   : > { %v358_v17 = vmax.f32 %v326_v13, 0.0  ;;  %756 = vst [vmem:[%s854_s23 + $0x18] sm:$0xff] %v692_v11   ;;  %v296_v19 = vmul.f32 0.01, %v232_v8  ;;  %v234_v20 = vadd.f32 %v824_v1, %v197_v9  ;;  %vm265_vm12 = vcmp.ge.f32.partialorder %v233_v10, 0.0 }
  0x25   : > { %v297_v22 = vmul.f32 0.01, %v233_v10  ;;  %v199_v23 = vmul.f32 %v814_v0, %v162_v14  ;;  %v235_v24 = vadd.f32 %v824_v1, %v198_v15  ;;  %v327_v25 = vsel %vm263_vm10, %v231_v7, %v295_v18 }
  0x26   : > { %v697_v21 = vpack.c.bf16 %v358_v17, %v357_v16  ;;  %v328_v26 = vsel %vm264_vm11, %v232_v8, %v296_v19  ;;  %vm266_vm13 = vcmp.ge.f32.partialorder %v234_v20, 0.0  ;;  %v298_v27 = vmul.f32 0.01, %v234_v20  ;;  %v172_v16 = vld [vmem:[%s819_s17 + $0xc8] sm:$0xff] }
  0x27   : > { %v359_v28 = vmax.f32 %v327_v25, 0.0  ;;  %v360_v29 = vmax.f32 %v328_v26, 0.0  ;;  %v329_v30 = vsel %vm265_vm12, %v233_v10, %v297_v22  ;;  %v236_v31 = vadd.f32 %v824_v1, %v199_v23 }
  0x28   : > { %757 = vst [vmem:[%s854_s23 + $0x20] sm:$0xff] %v697_v21   ;;  %v330_v35 = vsel %vm266_vm13, %v234_v20, %v298_v27  ;;  %v361_v36 = vmax.f32 %v329_v30, 0.0  ;;  %vm267_vm14 = vcmp.ge.f32.partialorder %v235_v24, 0.0  ;;  %v299_v37 = vmul.f32 0.01, %v235_v24  ;;  %v175_v30 = vld [vmem:[%s819_s17 + $0xe0] sm:$0xff] }
  0x29   : > { %v702_v39 = vpack.c.bf16 %v360_v29, %v359_v28  ;;  %v362_v40 = vmax.f32 %v330_v35, 0.0  ;;  %vm268_vm15 = vcmp.ge.f32.partialorder %v236_v31, 0.0  ;;  %v300_v41 = vmul.f32 0.01, %v236_v31  ;;  %v173_v28 = vld [vmem:[%s819_s17 + $0xd0] sm:$0xff]  ;;  %v174_v29 = vld [vmem:[%s819_s17 + $0xd8] sm:$0xff] }
  0x2a   : > { %v331_v42 = vsel %vm267_vm14, %v235_v24, %v299_v37  ;;  %v200_v43 = vmul.f32 %v814_v0, %v163_v32  ;;  %v201_v44 = vmul.f32 %v814_v0, %v164_v33  ;;  %v202_v45 = vmul.f32 %v814_v0, %v165_v34 }
  0x2b   : > { %758 = vst [vmem:[%s854_s23 + $0x28] sm:$0xff] %v702_v39   ;;  %v707_v49 = vpack.c.bf16 %v362_v40, %v361_v36  ;;  %v332_v50 = vsel %vm268_vm15, %v236_v31, %v300_v41  ;;  %v363_v51 = vmax.f32 %v331_v42, 0.0  ;;  %v203_v52 = vmul.f32 %v814_v0, %v166_v38  ;;  %v176_v40 = vld [vmem:[%s819_s17 + $0xe8] sm:$0xff] }
  0x2c   : > { %v364_v53 = vmax.f32 %v332_v50, 0.0  ;;  %v237_v54 = vadd.f32 %v824_v1, %v200_v43  ;;  %v238_v55 = vadd.f32 %v824_v1, %v201_v44  ;;  %v239_v56 = vadd.f32 %v824_v1, %v202_v45  ;;  %v177_v44 = vld [vmem:[%s819_s17 + $0xf0] sm:$0xff] }
  0x2d   : > { %759 = vst [vmem:[%s854_s23 + $0x30] sm:$0xff] %v707_v49   ;;  %v240_v57 = vadd.f32 %v824_v1, %v203_v52  ;;  %v204_v58 = vmul.f32 %v814_v0, %v167_v46  ;;  %v205_v59 = vmul.f32 %v814_v0, %v168_v47  ;;  %v206_v60 = vmul.f32 %v814_v0, %v169_v48 }
  0x2e   : > { %v712_v61 = vpack.c.bf16 %v364_v53, %v363_v51  ;;  %vm269_vm0 = vcmp.ge.f32.partialorder %v237_v54, 0.0  ;;  %vm270_vm1 = vcmp.ge.f32.partialorder %v238_v55, 0.0  ;;  %v301_v62 = vmul.f32 0.01, %v237_v54 }
  0x2f   : > { %v302_v2 = vmul.f32 0.01, %v238_v55  ;;  %vm271_vm2 = vcmp.ge.f32.partialorder %v239_v56, 0.0  ;;  %vm272_vm3 = vcmp.ge.f32.partialorder %v240_v57, 0.0  ;;  %v303_v3 = vmul.f32 0.01, %v239_v56 }
  0x30   : > { %760 = vst [vmem:[%s854_s23 + $0x38] sm:$0xff] %v712_v61   ;;  %v333_v4 = vsel %vm269_vm0, %v237_v54, %v301_v62  ;;  %v304_v5 = vmul.f32 0.01, %v240_v57  ;;  %v241_v6 = vadd.f32 %v824_v1, %v204_v58  ;;  %v242_v7 = vadd.f32 %v824_v1, %v205_v59 }
  0x31   : > { %v334_v8 = vsel %vm270_vm1, %v238_v55, %v302_v2  ;;  %v365_v9 = vmax.f32 %v333_v4, 0.0  ;;  %v335_v10 = vsel %vm271_vm2, %v239_v56, %v303_v3  ;;  %v207_v11 = vmul.f32 %v814_v0, %v170_v63  ;;  %v178_v56 = vld [vmem:[%s819_s17 + $0xf8] sm:$0xff] }
  0x32   : > { %v366_v13 = vmax.f32 %v334_v8, 0.0  ;;  %v336_v14 = vsel %vm272_vm3, %v240_v57, %v304_v5  ;;  %v367_v15 = vmax.f32 %v335_v10, 0.0  ;;  %vm273_vm4 = vcmp.ge.f32.partialorder %v241_v6, 0.0 }
  0x33   : > { %v368_v17 = vmax.f32 %v336_v14, 0.0  ;;  %vm274_vm5 = vcmp.ge.f32.partialorder %v242_v7, 0.0  ;;  %v305_v18 = vmul.f32 0.01, %v241_v6  ;;  %v306_v19 = vmul.f32 0.01, %v242_v7 }
  0x34   : > { %v717_v20 = vpack.c.bf16 %v366_v13, %v365_v9  ;;  %v243_v21 = vadd.f32 %v824_v1, %v206_v60  ;;  %v244_v22 = vadd.f32 %v824_v1, %v207_v11  ;;  %v208_v23 = vmul.f32 %v814_v0, %v171_v12 }
  0x35   : > { %v722_v24 = vpack.c.bf16 %v368_v17, %v367_v15  ;;  %v337_v25 = vsel %vm273_vm4, %v241_v6, %v305_v18  ;;  %v338_v26 = vsel %vm274_vm5, %v242_v7, %v306_v19  ;;  %v209_v27 = vmul.f32 %v814_v0, %v172_v16 }
  0x36   : > { %761 = vst [vmem:[%s854_s23 + $0x40] sm:$0xff] %v717_v20   ;;  %v369_v31 = vmax.f32 %v337_v25, 0.0  ;;  %v370_v32 = vmax.f32 %v338_v26, 0.0  ;;  %vm275_vm6 = vcmp.ge.f32.partialorder %v243_v21, 0.0  ;;  %vm276_vm7 = vcmp.ge.f32.partialorder %v244_v22, 0.0 }
  0x37   : > { %762 = vst [vmem:[%s854_s23 + $0x48] sm:$0xff] %v722_v24   ;;  %v307_v33 = vmul.f32 0.01, %v243_v21  ;;  %v308_v34 = vmul.f32 0.01, %v244_v22  ;;  %v245_v35 = vadd.f32 %v824_v1, %v208_v23  ;;  %v246_v36 = vadd.f32 %v824_v1, %v209_v27 }
  0x38   : > { %v727_v37 = vpack.c.bf16 %v370_v32, %v369_v31  ;;  %v210_v38 = vmul.f32 %v814_v0, %v173_v28  ;;  %v211_v39 = vmul.f32 %v814_v0, %v174_v29  ;;  %v212_v41 = vmul.f32 %v814_v0, %v175_v30 }
  0x39   : > { %v339_v42 = vsel %vm275_vm6, %v243_v21, %v307_v33  ;;  %v340_v43 = vsel %vm276_vm7, %v244_v22, %v308_v34  ;;  %vm277_vm8 = vcmp.ge.f32.partialorder %v245_v35, 0.0  ;;  %vm278_vm9 = vcmp.ge.f32.partialorder %v246_v36, 0.0 }
  0x3a   : > { %763 = vst [vmem:[%s854_s23 + $0x50] sm:$0xff] %v727_v37   ;;  %v371_v45 = vmax.f32 %v339_v42, 0.0  ;;  %v372_v46 = vmax.f32 %v340_v43, 0.0  ;;  %v309_v47 = vmul.f32 0.01, %v245_v35  ;;  %v247_v49 = vadd.f32 %v824_v1, %v210_v38 }
  0x3b   : > { %v310_v48 = vmul.f32 0.01, %v246_v36  ;;  %v248_v50 = vadd.f32 %v824_v1, %v211_v39  ;;  %v213_v51 = vmul.f32 %v814_v0, %v176_v40  ;;  %v249_v52 = vadd.f32 %v824_v1, %v212_v41 }
  0x3c   : > { %v732_v53 = vpack.c.bf16 %v372_v46, %v371_v45  ;;  %v341_v54 = vsel %vm277_vm8, %v245_v35, %v309_v47  ;;  %v214_v57 = vmul.f32 %v814_v0, %v177_v44  ;;  %vm279_vm10 = vcmp.ge.f32.partialorder %v247_v49, 0.0 }
  0x3d   : > { %v342_v55 = vsel %vm278_vm9, %v246_v36, %v310_v48  ;;  %v373_v58 = vmax.f32 %v341_v54, 0.0  ;;  %vm280_vm11 = vcmp.ge.f32.partialorder %v248_v50, 0.0  ;;  %v311_v60 = vmul.f32 0.01, %v247_v49 }
  0x3e   : > { %v374_v59 = vmax.f32 %v342_v55, 0.0  ;;  %764 = vst [vmem:[%s854_s23 + $0x58] sm:$0xff] %v732_v53   ;;  %v312_v61 = vmul.f32 0.01, %v248_v50  ;;  %v250_v62 = vadd.f32 %v824_v1, %v213_v51  ;;  %vm281_vm12 = vcmp.ge.f32.partialorder %v249_v52, 0.0 }
  0x3f   : > { %v313_v2 = vmul.f32 0.01, %v249_v52  ;;  %v215_v3 = vmul.f32 %v814_v0, %v178_v56  ;;  %v251_v4 = vadd.f32 %v824_v1, %v214_v57  ;;  %v343_v5 = vsel %vm279_vm10, %v247_v49, %v311_v60 }
  0x40   : > { %v737_v63 = vpack.c.bf16 %v374_v59, %v373_v58  ;;  %v344_v6 = vsel %vm280_vm11, %v248_v50, %v312_v61  ;;  %vm282_vm13 = vcmp.ge.f32.partialorder %v250_v62, 0.0  ;;  %v314_v7 = vmul.f32 0.01, %v250_v62 }
  0x41   : > { %v375_v8 = vmax.f32 %v343_v5, 0.0  ;;  %v376_v9 = vmax.f32 %v344_v6, 0.0  ;;  %v345_v10 = vsel %vm281_vm12, %v249_v52, %v313_v2  ;;  %v252_v11 = vadd.f32 %v824_v1, %v215_v3 }
  0x42   : > { %765 = vst [vmem:[%s854_s23 + $0x60] sm:$0xff] %v737_v63   ;;  %v346_v12 = vsel %vm282_vm13, %v250_v62, %v314_v7  ;;  %v377_v13 = vmax.f32 %v345_v10, 0.0  ;;  %vm283_vm14 = vcmp.ge.f32.partialorder %v251_v4, 0.0  ;;  %v315_v14 = vmul.f32 0.01, %v251_v4 }
  0x43   : > { %v742_v0 = vpack.c.bf16 %v376_v9, %v375_v8  ;;  %v378_v15 = vmax.f32 %v346_v12, 0.0  ;;  %vm284_vm15 = vcmp.ge.f32.partialorder %v252_v11, 0.0  ;;  %v316_v16 = vmul.f32 0.01, %v252_v11 }
  0x44   : > { %v347_v17 = vsel %vm283_vm14, %v251_v4, %v315_v14 }
  0x45   : > { %766 = vst [vmem:[%s854_s23 + $0x68] sm:$0xff] %v742_v0   ;;  %v747_v18 = vpack.c.bf16 %v378_v15, %v377_v13  ;;  %v348_v19 = vsel %vm284_vm15, %v252_v11, %v316_v16  ;;  %v379_v20 = vmax.f32 %v347_v17, 0.0 }
  0x46   : > { %v380_v21 = vmax.f32 %v348_v19, 0.0 }
  0x47   : > { %767 = vst [vmem:[%s854_s23 + $0x70] sm:$0xff] %v747_v18  }
  0x48   : > { %v752_v22 = vpack.c.bf16 %v380_v21, %v379_v20 }
  0x4a   : > { %768 = vst [vmem:[%s854_s23 + $0x78] sm:$0xff] %v752_v22  }
  0x4b PF: > { %s12_s9 = sadd.s32 1, %s783_s9  }
  0x4c   : > { %p9_p4 = scmp.ge.s32.totalorder %s12_s9, 6  }
  0x4e   :  { %11 = sbr.rel (!%p9_p4) target bundleno = 1 (0x1), region = 58 }

// kernel: bottleneck_forward.6
= control target key start
LH: loop header
LB: loop body
LE: loop exit
PB: predicated region body
PF: predicated region fallthrough
CT: control target
= control target key end

     0   :  { %s1062_s12 = smov 0   ;;  %s1310_s0 = inlined_call_operand.vmem [shape: bf16[1024,16], index: 0, kind: input, shape index: {}]   ;;  %s1311_s1 = inlined_call_operand.vmem [shape: bf16[16,128], index: 1, kind: input, shape index: {}]   ;;  %s1312_s2 = inlined_call_operand.vmem [shape: f32[1024,128], index: 2, kind: output, shape index: {0}]   ;;  %s1313_s3 = inlined_call_operand.vmem [shape: f32[2,128], index: 3, kind: output, shape index: {1}]  }
   0x1 LB: > { %s1068_s13 = sadd.s32 4294967295, %s1039_s12   ;;  %p912_p0 = scmp.ge.s32.totalorder %s1039_s12, 1  ;;  %s1039_s12 = sphi %s1062_s12, %s14_s12  }
   0x2   : > { %p136_p1 = scmp.lt.s32.totalorder %s1039_s12, 5 }
   0x4   : > { %p137_p2 = pnand %p912_p0, %p136_p1 }
   0x5   : > { %s913_s14 = sshll.u32 (!%p137_p2), %s1068_s13, 5  ;;  %p917_p4 = scmp.ne.s32.totalorder (!%p137_p2), %s1068_s13, 0 }
   0x6   : > { %140 = sbr.rel (%p137_p2) target bundleno = 321 (0x141), region = 28  ;;  %p161_p3 = scmp.lt.s32.totalorder (!%p137_p2), %s913_s14, 127 }
   0xd   : > { %s1315_s14 = smov (!%p161_p3, %s913_s14), 127  ;;  %176 = sbr.rel (%p917_p4) target bundleno = 20 (0x14), region = 32 }
   0xe   : > { %s914_s15 = sshll.u32 %s1315_s14, 2  ;;  %s916_s16 = sshll.u32 %s1315_s14, 3  ;;  %v1041_v0 = vmov (!%p917_p4), 0.0  }
   0xf   : > { %s1076_s19 = scalar_lea.vmem %s1310_s0, %s914_s15  ;;  %s1081_s22 = scalar_lea.vmem %s1312_s2, %s916_s16  ;;  %177 = vst [vmem:[%s1313_s3] sm:$0x3] (!%p917_p4), %v1041_v0 }
  0x14 PF: > { %v1016_v1 = vld [vmem:[%s1311_s1] sm:$0xff]   ;;  %vm298_vm0 = vcmask 130048   ;;  %v1018_v3 = vld [vmem:[%s1076_s19 + $0x8] sm:$0xff]   ;;  %v1019_v4 = vld [vmem:[%s1076_s19 + $0x10] sm:$0xff]   ;;  %v540_v18 = vlaneseq  ;;  %s951_s27 = sshll.u32 %s1068_s13, 8 }
  0x15   : > { %v1017_v2 = vld [vmem:[%s1076_s19] sm:$0xff]   ;;  %971 = vmatprep.subr.bf16.mxu0 %v1016_v1  ;;  %1005 = vmatprep.subr.bf16.mxu1 %v1016_v1  ;;  %v1020_v5 = vld [vmem:[%s1076_s19 + $0x18] sm:$0xff]   ;;  %v1026_v8 = vld [vmem:[%s1076_s19 + $0x48] sm:$0xff]   ;;  %v1125_v20 = vstv %s951_s27 }
  0x16   : > { %972 = vmatpush3.bf16.msra.mxu0 %v1016_v1  ;;  %973 = vmatprep.mubr.msk.bf16.mxu0 %vm298_vm0, %v1017_v2  ;;  %v1021_v6 = vld [vmem:[%s1076_s19 + $0x20] sm:$0xff]   ;;  %v1027_v9 = vld [vmem:[%s1076_s19 + $0x50] sm:$0xff]   ;;  %v1028_v10 = vld [vmem:[%s1076_s19 + $0x58] sm:$0xff]   ;;  %v1122_v19 = vshrl.u32 %v540_v18, 7 }
  0x17   : > { %1006 = vmatpush3.bf16.msra.mxu1 %v1016_v1  ;;  %v1025_v7 = vld [vmem:[%s1076_s19 + $0x40] sm:$0xff]   ;;  %v1022_v12 = vld [vmem:[%s1076_s19 + $0x28] sm:$0xff]   ;;  %v1023_v13 = vld [vmem:[%s1076_s19 + $0x30] sm:$0xff]  }
  0x18   : > { %989 = vmatprep.mubr.msk.bf16.mxu1 %vm298_vm0, %v1025_v7  ;;  %v1029_v11 = vld [vmem:[%s1076_s19 + $0x60] sm:$0xff]   ;;  %v1030_v14 = vld [vmem:[%s1076_s19 + $0x68] sm:$0xff]   ;;  %v1031_v15 = vld [vmem:[%s1076_s19 + $0x70] sm:$0xff]   ;;  %v543_v21 = vadd.s32 16, %v1122_v19  ;;  %v542_v22 = vadd.s32 8, %v1122_v19  ;;  %v575_v23 = vadd.s32 %v1125_v20, %v1122_v19  ;;  %v544_v24 = vadd.s32 24, %v1122_v19 }
  0x19   : > { %974 = vmatmul.mubr.msk.bf16.vlgmr.msra.gmra.mrb[0].mxu0 %vm298_vm0, %v1018_v3  ;;  %v1024_v16 = vld [vmem:[%s1076_s19 + $0x38] sm:$0xff]   ;;  %v545_v28 = vadd.s32 32, %v1122_v19  ;;  %v547_v30 = vadd.s32 48, %v1122_v19  ;;  %v546_v31 = vadd.s32 40, %v1122_v19  ;;  %v548_v35 = vadd.s32 56, %v1122_v19 }
  0x1a   : > { %977 = vmatprep.mubr.msk.bf16.mxu0 %vm298_vm0, %v1019_v4  ;;  %990 = vmatmul.mubr.msk.bf16.vlgmr.msra.gmra.mrb[0].mxu1 %vm298_vm0, %v1026_v8  ;;  %v1032_v17 = vld [vmem:[%s1076_s19 + $0x78] sm:$0xff]   ;;  %v577_v25 = vadd.s32 %v1125_v20, %v543_v21  ;;  %v576_v26 = vadd.s32 %v1125_v20, %v542_v22  ;;  %vm607_vm1 = vcmp.lt.s32.totalorder %v575_v23, 1024  ;;  %v578_v27 = vadd.s32 %v1125_v20, %v544_v24 }
  0x1b   : > { %993 = vmatprep.mubr.msk.bf16.mxu1 %vm298_vm0, %v1027_v9  ;;  %v579_v37 = vadd.s32 %v1125_v20, %v545_v28  ;;  %v581_v40 = vadd.s32 %v1125_v20, %v547_v30  ;;  %v580_v41 = vadd.s32 %v1125_v20, %v546_v31  ;;  %v582_v46 = vadd.s32 %v1125_v20, %v548_v35 }
  0x1c   : > { %vm609_vm2 = vcmp.lt.s32.totalorder %v577_v25, 1024  ;;  %vm608_vm3 = vcmp.lt.s32.totalorder %v576_v26, 1024  ;;  %vm610_vm4 = vcmp.lt.s32.totalorder %v578_v27, 1024  ;;  %v549_v47 = vadd.s32 64, %v1122_v19 }
  0x1d   : > { %vm611_vm5 = vcmp.lt.s32.totalorder %v579_v37, 1024  ;;  %vm613_vm6 = vcmp.lt.s32.totalorder %v581_v40, 1024  ;;  %vm612_vm7 = vcmp.lt.s32.totalorder %v580_v41, 1024  ;;  %v551_v54 = vadd.s32 80, %v1122_v19 }
  0x1e   : > { %v550_v60 = vadd.s32 72, %v1122_v19  ;;  %v583_v0 = vadd.s32 %v1125_v20, %v549_v47  ;;  %v552_v1 = vadd.s32 88, %v1122_v19  ;;  %vm614_vm8 = vcmp.lt.s32.totalorder %v582_v46, 1024 }
  0x1f   : > { %v585_v8 = vadd.s32 %v1125_v20, %v551_v54  ;;  %v553_v21 = vadd.s32 96, %v1122_v19  ;;  %v555_v24 = vadd.s32 112, %v1122_v19  ;;  %v554_v25 = vadd.s32 104, %v1122_v19 }
  0x20   : > { %vm615_vm9 = vcmp.lt.s32.totalorder %v583_v0, 1024  ;;  %v557_v35 = vadd.s32 128, %v1122_v19 }
  0x21   : > { %978 = vmatmul.mubr.msk.bf16.gmra.mrb[4].mxu0 %vm298_vm0, %v1020_v5  ;;  %vm617_vm10 = vcmp.lt.s32.totalorder %v585_v8, 1024  ;;  %v587_v40 = vadd.s32 %v1125_v20, %v553_v21 }
  0x22   : > { %981 = vmatprep.mubr.msk.bf16.mxu0 %vm298_vm0, %v1021_v6  ;;  %994 = vmatmul.mubr.msk.bf16.gmra.mrb[4].mxu1 %vm298_vm0, %v1028_v10 }
  0x23   : > { %997 = vmatprep.mubr.msk.bf16.mxu1 %vm298_vm0, %v1029_v11  ;;  %vm619_vm13 = vcmp.lt.s32.totalorder %v587_v40, 1024 }
  0x29   : > { %982 = vmatmul.mubr.msk.bf16.gmra.mrb[8].mxu0 %vm298_vm0, %v1022_v12  ;;  %v584_v12 = vadd.s32 %v1125_v20, %v550_v60 }
  0x2a   : > { %985 = vmatprep.mubr.msk.bf16.mxu0 %vm298_vm0, %v1023_v13  ;;  %998 = vmatmul.mubr.msk.bf16.gmra.mrb[8].mxu1 %vm298_vm0, %v1030_v14  ;;  %v586_v14 = vadd.s32 %v1125_v20, %v552_v1 }
  0x2b   : > { %1001 = vmatprep.mubr.msk.bf16.mxu1 %vm298_vm0, %v1031_v15  ;;  %vm616_vm11 = vcmp.lt.s32.totalorder %v584_v12, 1024 }
  0x2c   : > { %vm618_vm12 = vcmp.lt.s32.totalorder %v586_v14, 1024 }
  0x31   : > { %986 = vmatmul.mubr.msk.bf16.gmra.mrb[12].mxu0 %vm298_vm0, %v1024_v16 }
  0x32   : > { %1002 = vmatmul.mubr.msk.bf16.gmra.mrb[12].mxu1 %vm298_vm0, %v1032_v17 }
  0xec   : > { %v975_v29 = vpop.f32.mrb[0].mxu0 }
  0xed   : > { %510 = vst [vmem:[%s1081_s22 + $0x10] sm:$0xff] %v975_v29  ;;  %v381_v32 = vpop.f32.mrb[1].mxu0  ;;  %v705_v38 = vsel %vm609_vm2, %v975_v29, 0.0  ;;  %v1148_v48 = vpop.f32.mrb[0].mxu1 }
  0xee   : > { %508 = vst [vmem:[%s1081_s22] sm:$0xff] %v381_v32  ;;  %v703_v33 = vsel %vm607_vm1, %v381_v32, 0.0  ;;  %v976_v34 = vpop.f32.mrb[2].mxu0  ;;  %v774_v49 = vmul.f32 %v705_v38, %v705_v38  ;;  %526 = vst [vmem:[%s1081_s22 + $0x90] sm:$0xff] %v1148_v48  ;;  %v1152_v52 = vpop.f32.mrb[1].mxu1 }
  0xef   : > { %511 = vst [vmem:[%s1081_s22 + $0x18] sm:$0xff] %v976_v34  ;;  %v384_v36 = vpop.f32.mrb[3].mxu0  ;;  %v772_v42 = vmul.f32 %v703_v33, %v703_v33  ;;  %v706_v45 = vsel %vm610_vm4, %v976_v34, 0.0  ;;  %524 = vst [vmem:[%s1081_s22 + $0x80] sm:$0xff] %v1152_v52  ;;  %v1157_v55 = vpop.f32.mrb[2].mxu1  ;;  %v556_v34 = vadd.s32 120, %v1122_v19 }
  0xf0   : > { %509 = vst [vmem:[%s1081_s22 + $0x8] sm:$0xff] %v384_v36  ;;  %v704_v39 = vsel %vm608_vm3, %v384_v36, 0.0  ;;  %v775_v56 = vmul.f32 %v706_v45, %v706_v45  ;;  %527 = vst [vmem:[%s1081_s22 + $0x98] sm:$0xff] %v1157_v55  ;;  %v1163_v61 = vpop.f32.mrb[3].mxu1 }
  0xf1   : > { %v735_v43 = vadd.f32 %v704_v39, %v703_v33  ;;  %v773_v44 = vmul.f32 %v704_v39, %v704_v39  ;;  %525 = vst [vmem:[%s1081_s22 + $0x88] sm:$0xff] %v1163_v61 }
  0xf3   : > { %v736_v50 = vadd.f32 %v735_v43, %v705_v38  ;;  %v804_v51 = vadd.f32 %v773_v44, %v772_v42  ;;  %v589_v43 = vadd.s32 %v1125_v20, %v555_v24  ;;  %v588_v44 = vadd.s32 %v1125_v20, %v554_v25 }
  0xf4   : > { %v979_v53 = vpop.f32.mrb[4].mxu0 }
  0xf5   : > { %v805_v57 = vadd.f32 %v804_v51, %v774_v49  ;;  %514 = vst [vmem:[%s1081_s22 + $0x30] sm:$0xff] %v979_v53  ;;  %v397_v58 = vpop.f32.mrb[5].mxu0  ;;  %v737_v59 = vadd.f32 %v736_v50, %v706_v45  ;;  %v709_v6 = vsel %vm613_vm6, %v979_v53, 0.0  ;;  %v1178_v15 = vpop.f32.mrb[4].mxu1  ;;  %v590_v50 = vadd.s32 %v1125_v20, %v556_v34 }
  0xf6   : > { %512 = vst [vmem:[%s1081_s22 + $0x20] sm:$0xff] %v397_v58  ;;  %v707_v62 = vsel %vm611_vm5, %v397_v58, 0.0  ;;  %v980_v63 = vpop.f32.mrb[6].mxu0  ;;  %v778_v16 = vmul.f32 %v709_v6, %v709_v6  ;;  %530 = vst [vmem:[%s1081_s22 + $0xb0] sm:$0xff] %v1178_v15  ;;  %v1183_v22 = vpop.f32.mrb[5].mxu1  ;;  %v591_v51 = vadd.s32 %v1125_v20, %v557_v35  ;;  %v558_v53 = vadd.s32 136, %v1122_v19 }
  0xf7   : > { %v738_v2 = vadd.f32 %v737_v59, %v707_v62  ;;  %v776_v3 = vmul.f32 %v707_v62, %v707_v62  ;;  %v806_v4 = vadd.f32 %v805_v57, %v775_v56  ;;  %515 = vst [vmem:[%s1081_s22 + $0x38] sm:$0xff] %v980_v63  ;;  %v400_v5 = vpop.f32.mrb[7].mxu0  ;;  %v710_v13 = vsel %vm614_vm8, %v980_v63, 0.0  ;;  %528 = vst [vmem:[%s1081_s22 + $0xa0] sm:$0xff] %v1183_v22  ;;  %v1189_v26 = vpop.f32.mrb[6].mxu1 }
  0xf8   : > { %513 = vst [vmem:[%s1081_s22 + $0x28] sm:$0xff] %v400_v5  ;;  %v708_v7 = vsel %vm612_vm7, %v400_v5, 0.0  ;;  %v779_v27 = vmul.f32 %v710_v13, %v710_v13  ;;  %531 = vst [vmem:[%s1081_s22 + $0xb8] sm:$0xff] %v1189_v26  ;;  %v1194_v31 = vpop.f32.mrb[7].mxu1  ;;  %vm621_vm14 = vcmp.lt.s32.totalorder %v589_v43, 1024  ;;  %vm620_vm15 = vcmp.lt.s32.totalorder %v588_v44, 1024 }
  0xf9   : > { %v807_v9 = vadd.f32 %v806_v4, %v776_v3  ;;  %v739_v10 = vadd.f32 %v738_v2, %v708_v7  ;;  %v777_v11 = vmul.f32 %v708_v7, %v708_v7  ;;  %529 = vst [vmem:[%s1081_s22 + $0xa8] sm:$0xff] %v1194_v31  ;;  %v559_v62 = vadd.s32 144, %v1122_v19 }
  0xfa   : > { %v560_v4 = vadd.s32 152, %v1122_v19  ;;  %vm622_vm0 = vcmp.lt.s32.totalorder %v590_v50, 1024  ;;  %vm623_vm1 = vcmp.lt.s32.totalorder %v591_v51, 1024  ;;  %v592_v8 = vadd.s32 %v1125_v20, %v558_v53 }
  0xfb   : > { %v740_v17 = vadd.f32 %v739_v10, %v709_v6  ;;  %v808_v18 = vadd.f32 %v807_v9, %v777_v11 }
  0xfc   : > { %v983_v23 = vpop.f32.mrb[8].mxu0  ;;  %v594_v24 = vadd.s32 %v1125_v20, %v560_v4  ;;  %vm624_vm2 = vcmp.lt.s32.totalorder %v592_v8, 1024 }
  0xfd   : > { %v809_v28 = vadd.f32 %v808_v18, %v778_v16  ;;  %518 = vst [vmem:[%s1081_s22 + $0x50] sm:$0xff] %v983_v23  ;;  %v413_v29 = vpop.f32.mrb[9].mxu0  ;;  %v741_v30 = vadd.f32 %v740_v17, %v710_v13  ;;  %v713_v41 = vsel %vm617_vm10, %v983_v23, 0.0  ;;  %v1213_v54 = vpop.f32.mrb[8].mxu1  ;;  %v561_v13 = vadd.s32 160, %v1122_v19 }
  0xfe   : > { %516 = vst [vmem:[%s1081_s22 + $0x40] sm:$0xff] %v413_v29  ;;  %v711_v32 = vsel %vm615_vm9, %v413_v29, 0.0  ;;  %v984_v33 = vpop.f32.mrb[10].mxu0  ;;  %v782_v56 = vmul.f32 %v713_v41, %v713_v41  ;;  %534 = vst [vmem:[%s1081_s22 + $0xd0] sm:$0xff] %v1213_v54  ;;  %v1217_v59 = vpop.f32.mrb[9].mxu1  ;;  %v593_v17 = vadd.s32 %v1125_v20, %v559_v62  ;;  %vm626_vm4 = vcmp.lt.s32.totalorder %v594_v24, 1024 }
  0xff   : > { %v742_v36 = vadd.f32 %v741_v30, %v711_v32  ;;  %v780_v37 = vmul.f32 %v711_v32, %v711_v32  ;;  %v810_v38 = vadd.f32 %v809_v28, %v779_v27  ;;  %519 = vst [vmem:[%s1081_s22 + $0x58] sm:$0xff] %v984_v33  ;;  %v416_v39 = vpop.f32.mrb[11].mxu0  ;;  %v714_v49 = vsel %vm618_vm12, %v984_v33, 0.0  ;;  %532 = vst [vmem:[%s1081_s22 + $0xc0] sm:$0xff] %v1217_v59  ;;  %v1222_v63 = vpop.f32.mrb[10].mxu1 }
 0x100   : > { %517 = vst [vmem:[%s1081_s22 + $0x48] sm:$0xff] %v416_v39  ;;  %v712_v42 = vsel %vm616_vm11, %v416_v39, 0.0  ;;  %v783_v0 = vmul.f32 %v714_v49, %v714_v49  ;;  %535 = vst [vmem:[%s1081_s22 + $0xd8] sm:$0xff] %v1222_v63  ;;  %v1228_v5 = vpop.f32.mrb[11].mxu1  ;;  %v719_v27 = vsel %vm623_vm1, %v1152_v52, 0.0  ;;  %v562_v28 = vadd.s32 168, %v1122_v19 }
 0x101   : > { %v811_v45 = vadd.f32 %v810_v38, %v780_v37  ;;  %v743_v46 = vadd.f32 %v742_v36, %v712_v42  ;;  %v781_v47 = vmul.f32 %v712_v42, %v712_v42  ;;  %533 = vst [vmem:[%s1081_s22 + $0xc8] sm:$0xff] %v1228_v5  ;;  %v595_v34 = vadd.s32 %v1125_v20, %v561_v13 }
 0x102   : > { %vm625_vm3 = vcmp.lt.s32.totalorder %v593_v17, 1024  ;;  %v563_v36 = vadd.s32 176, %v1122_v19  ;;  %v564_v52 = vadd.s32 184, %v1122_v19  ;;  %v720_v43 = vsel %vm624_vm2, %v1163_v61, 0.0 }
 0x103   : > { %v744_v57 = vadd.f32 %v743_v46, %v713_v41  ;;  %v812_v58 = vadd.f32 %v811_v45, %v781_v47  ;;  %v788_v41 = vmul.f32 %v719_v27, %v719_v27  ;;  %v596_v44 = vadd.s32 %v1125_v20, %v562_v28 }
 0x104   : > { %v987_v60 = vpop.f32.mrb[12].mxu0  ;;  %vm627_vm5 = vcmp.lt.s32.totalorder %v595_v34, 1024  ;;  %v565_v47 = vadd.s32 192, %v1122_v19  ;;  %v597_v50 = vadd.s32 %v1125_v20, %v563_v36  ;;  %v722_v61 = vsel %vm626_vm4, %v1157_v55, 0.0 }
 0x105   : > { %v813_v1 = vadd.f32 %v812_v58, %v782_v56  ;;  %522 = vst [vmem:[%s1081_s22 + $0x70] sm:$0xff] %v987_v60  ;;  %v429_v2 = vpop.f32.mrb[13].mxu0  ;;  %v745_v3 = vadd.f32 %v744_v57, %v714_v49  ;;  %v717_v14 = vsel %vm621_vm14, %v987_v60, 0.0  ;;  %v1246_v29 = vpop.f32.mrb[12].mxu1  ;;  %v721_v49 = vsel %vm625_vm3, %v1148_v48, 0.0 }
 0x106   : > { %520 = vst [vmem:[%s1081_s22 + $0x60] sm:$0xff] %v429_v2  ;;  %v715_v6 = vsel %vm619_vm13, %v429_v2, 0.0  ;;  %v988_v7 = vpop.f32.mrb[14].mxu0  ;;  %v786_v30 = vmul.f32 %v717_v14, %v717_v14  ;;  %538 = vst [vmem:[%s1081_s22 + $0xf0] sm:$0xff] %v1246_v29  ;;  %v1251_v35 = vpop.f32.mrb[13].mxu1  ;;  %v789_v56 = vmul.f32 %v720_v43, %v720_v43  ;;  %v598_v57 = vadd.s32 %v1125_v20, %v564_v52 }
 0x107   : > { %v746_v9 = vadd.f32 %v745_v3, %v715_v6  ;;  %v784_v10 = vmul.f32 %v715_v6, %v715_v6  ;;  %v814_v11 = vadd.f32 %v813_v1, %v783_v0  ;;  %523 = vst [vmem:[%s1081_s22 + $0x78] sm:$0xff] %v988_v7  ;;  %v432_v12 = vpop.f32.mrb[15].mxu0  ;;  %v718_v25 = vsel %vm622_vm0, %v988_v7, 0.0  ;;  %536 = vst [vmem:[%s1081_s22 + $0xe0] sm:$0xff] %v1251_v35  ;;  %v1257_v37 = vpop.f32.mrb[14].mxu1 }
 0x108   : > { %521 = vst [vmem:[%s1081_s22 + $0x68] sm:$0xff] %v432_v12  ;;  %v716_v16 = vsel %vm620_vm15, %v432_v12, 0.0  ;;  %v787_v38 = vmul.f32 %v718_v25, %v718_v25  ;;  %539 = vst [vmem:[%s1081_s22 + $0xf8] sm:$0xff] %v1257_v37  ;;  %v1261_v42 = vpop.f32.mrb[15].mxu1  ;;  %v723_v58 = vsel %vm627_vm5, %v1183_v22, 0.0  ;;  %vm628_vm6 = vcmp.lt.s32.totalorder %v596_v44, 1024 }
 0x109   : > { %v815_v18 = vadd.f32 %v814_v11, %v784_v10  ;;  %v747_v21 = vadd.f32 %v746_v9, %v716_v16  ;;  %v785_v23 = vmul.f32 %v716_v16, %v716_v16  ;;  %537 = vst [vmem:[%s1081_s22 + $0xe8] sm:$0xff] %v1261_v42  ;;  %v566_v60 = vadd.s32 200, %v1122_v19 }
 0x10a   : > { %v790_v62 = vmul.f32 %v721_v49, %v721_v49  ;;  %v599_v2 = vadd.s32 %v1125_v20, %v565_v47  ;;  %vm629_vm7 = vcmp.lt.s32.totalorder %v597_v50, 1024  ;;  %v567_v48 = vadd.s32 208, %v1122_v19 }
 0x10b   : > { %v748_v32 = vadd.f32 %v747_v21, %v717_v14  ;;  %v816_v33 = vadd.f32 %v815_v18, %v785_v23  ;;  %v568_v3 = vadd.s32 216, %v1122_v19  ;;  %v791_v4 = vmul.f32 %v722_v61, %v722_v61 }
 0x10c   : > { %v792_v8 = vmul.f32 %v723_v58, %v723_v58  ;;  %vm630_vm8 = vcmp.lt.s32.totalorder %v598_v57, 1024  ;;  %v724_v55 = vsel %vm628_vm6, %v1194_v31, 0.0  ;;  %v600_v22 = vadd.s32 %v1125_v20, %v566_v60 }
 0x10d   : > { %v817_v39 = vadd.f32 %v816_v33, %v786_v30  ;;  %v749_v40 = vadd.f32 %v748_v32, %v718_v25  ;;  %vm631_vm9 = vcmp.lt.s32.totalorder %v599_v2, 1024  ;;  %v569_v11 = vadd.s32 224, %v1122_v19 }
 0x10e   : > { %v725_v12 = vsel %vm629_vm7, %v1178_v15, 0.0  ;;  %v601_v13 = vadd.s32 %v1125_v20, %v567_v48  ;;  %v793_v17 = vmul.f32 %v724_v55, %v724_v55  ;;  %v602_v18 = vadd.s32 %v1125_v20, %v568_v3 }
 0x10f   : > { %v750_v45 = vadd.f32 %v749_v40, %v719_v27  ;;  %v818_v46 = vadd.f32 %v817_v39, %v787_v38  ;;  %v726_v21 = vsel %vm630_vm8, %v1189_v26, 0.0  ;;  %v727_v31 = vsel %vm631_vm9, %v1217_v59, 0.0 }
 0x110   : > { %vm632_vm10 = vcmp.lt.s32.totalorder %v600_v22, 1024  ;;  %v570_v23 = vadd.s32 232, %v1122_v19  ;;  %v794_v24 = vmul.f32 %v725_v12, %v725_v12  ;;  %v603_v28 = vadd.s32 %v1125_v20, %v569_v11 }
 0x111   : > { %v819_v51 = vadd.f32 %v818_v46, %v788_v41  ;;  %v751_v53 = vadd.f32 %v750_v45, %v720_v43  ;;  %vm633_vm11 = vcmp.lt.s32.totalorder %v601_v13, 1024  ;;  %v571_v15 = vadd.s32 240, %v1122_v19  ;;  %v841_v13 = vld [vmem:[%s1313_s3] sm:$0x3] }
 0x112   : > { %v795_v30 = vmul.f32 %v726_v21, %v726_v21  ;;  %v796_v34 = vmul.f32 %v727_v31, %v727_v31  ;;  %vm634_vm12 = vcmp.lt.s32.totalorder %v602_v18, 1024  ;;  %v728_v26 = vsel %vm632_vm10, %v1228_v5, 0.0 }
 0x113   : > { %v752_v0 = vadd.f32 %v751_v53, %v721_v49  ;;  %v820_v1 = vadd.f32 %v819_v51, %v789_v56  ;;  %v572_v59 = vadd.s32 248, %v1122_v19  ;;  %vm635_vm13 = vcmp.lt.s32.totalorder %v603_v28, 1024 }
 0x114   : > { %v604_v38 = vadd.s32 %v1125_v20, %v570_v23  ;;  %v729_v39 = vsel %vm633_vm11, %v1213_v54, 0.0  ;;  %v605_v40 = vadd.s32 %v1125_v20, %v571_v15  ;;  %v797_v44 = vmul.f32 %v728_v26, %v728_v26 }
 0x115   : > { %v821_v6 = vadd.f32 %v820_v1, %v790_v62  ;;  %v753_v7 = vadd.f32 %v752_v0, %v722_v61  ;;  %v730_v45 = vsel %vm634_vm12, %v1222_v63, 0.0  ;;  %v731_v46 = vsel %vm635_vm13, %v1251_v35, 0.0 }
 0x116   : > { %v606_v5 = vadd.s32 %v1125_v20, %v572_v59  ;;  %v798_v47 = vmul.f32 %v729_v39, %v729_v39  ;;  %vm636_vm14 = vcmp.lt.s32.totalorder %v604_v38, 1024  ;;  %vm637_vm15 = vcmp.lt.s32.totalorder %v605_v40, 1024 }
 0x117   : > { %v754_v9 = vadd.f32 %v753_v7, %v723_v58  ;;  %v822_v10 = vadd.f32 %v821_v6, %v791_v4  ;;  %v799_v50 = vmul.f32 %v730_v45, %v730_v45  ;;  %v800_v54 = vmul.f32 %v731_v46, %v731_v46 }
 0x118   : > { %v732_v56 = vsel %vm636_vm14, %v1261_v42, 0.0  ;;  %vm638_vm0 = vcmp.lt.s32.totalorder %v606_v5, 1024  ;;  %v733_v63 = vsel %vm637_vm15, %v1246_v29, 0.0  ;;  %vm842_vm1 = vcmask 1040384  }
 0x119   : > { %v823_v14 = vadd.f32 %v822_v10, %v792_v8  ;;  %v755_v16 = vadd.f32 %v754_v9, %v724_v55  ;;  %v801_v60 = vmul.f32 %v732_v56, %v732_v56  ;;  %v734_v20 = vsel %vm638_vm0, %v1257_v37, 0.0 }
 0x11a   : > { %v802_v62 = vmul.f32 %v733_v63, %v733_v63  ;;  %v803_v2 = vmul.f32 %v734_v20, %v734_v20 }
 0x11b   : > { %v756_v25 = vadd.f32 %v755_v16, %v725_v12  ;;  %v824_v27 = vadd.f32 %v823_v14, %v793_v17 }
 0x11d   : > { %v825_v32 = vadd.f32 %v824_v27, %v794_v24  ;;  %v757_v33 = vadd.f32 %v756_v25, %v726_v21 }
 0x11f   : > { %v758_v36 = vadd.f32 %v757_v33, %v727_v31  ;;  %v826_v52 = vadd.f32 %v825_v32, %v795_v30 }
 0x121   : > { %v827_v41 = vadd.f32 %v826_v52, %v796_v34  ;;  %v759_v43 = vadd.f32 %v758_v36, %v728_v26 }
 0x123   : > { %v760_v19 = vadd.f32 %v759_v43, %v729_v39  ;;  %v828_v49 = vadd.f32 %v827_v41, %v797_v44 }
 0x125   : > { %v829_v51 = vadd.f32 %v828_v49, %v798_v47  ;;  %v761_v53 = vadd.f32 %v760_v19, %v730_v45 }
 0x127   : > { %v762_v57 = vadd.f32 %v761_v53, %v731_v46  ;;  %v830_v61 = vadd.f32 %v829_v51, %v799_v50 }
 0x129   : > { %v831_v58 = vadd.f32 %v830_v61, %v800_v54  ;;  %v763_v35 = vadd.f32 %v762_v57, %v732_v56 }
 0x12b   : > { %v764_v0 = vadd.f32 %v763_v35, %v733_v63  ;;  %v832_v1 = vadd.f32 %v831_v58, %v801_v60 }
 0x12d   : > { %v765_v48 = vadd.f32 %v764_v0, %v734_v20  ;;  %v833_v3 = vadd.f32 %v832_v1, %v802_v62 }
 0x12f   : > { %v766_v4 = vrot.slane %v765_v48, 4  ;;  %v834_v6 = vadd.f32 %v833_v3, %v803_v2 }
 0x131   : > { %v767_v7 = vadd.f32 %v766_v4, %v765_v48  ;;  %v835_v42 = vrot.slane %v834_v6, 4 }
 0x133   : > { %v768_v8 = vrot.slane %v767_v7, 2  ;;  %v836_v55 = vadd.f32 %v835_v42, %v834_v6 }
 0x135   : > { %v769_v22 = vadd.f32 %v768_v8, %v767_v7  ;;  %v837_v9 = vrot.slane %v836_v55, 2 }
 0x137   : > { %v770_v29 = vrot.slane %v769_v22, 1  ;;  %v838_v10 = vadd.f32 %v837_v9, %v836_v55 }
 0x139   : > { %v839_v11 = vrot.slane %v838_v10, 1  ;;  %v771_v12 = vadd.f32 %v770_v29, %v769_v22 }
 0x13b   : > { %v840_v37 = vadd.f32 %v839_v11, %v838_v10 }
 0x13d   : > { %v843_v14 = vsel %vm842_vm1, %v771_v12, %v840_v37 }
 0x13e   : > { %v844_v16 = vadd.f32 %v843_v14, %v841_v13 }
 0x140   : > { %845 = vst [vmem:[%s1313_s3] sm:$0x3] %v844_v16 }
 0x141 PF: > { %s14_s12 = sadd.s32 1, %s1039_s12  }
 0x142   : > { %p11_p5 = scmp.ge.s32.totalorder %s14_s12, 6  }
 0x144   :  { %13 = sbr.rel (!%p11_p5) target bundleno = 1 (0x1), region = 70 }

// kernel: bottleneck_forward.8
= control target key start
LH: loop header
LB: loop body
LE: loop exit
PB: predicated region body
PF: predicated region fallthrough
CT: control target
= control target key end

     0   :  { %s1118_s12 = smov 0   ;;  %s1369_s0 = inlined_call_operand.vmem [shape: bf16[1024,128], index: 0, kind: input, shape index: {}]   ;;  %s1370_s1 = inlined_call_operand.vmem [shape: bf16[128,128], index: 1, kind: input, shape index: {}]   ;;  %s1371_s2 = inlined_call_operand.vmem [shape: f32[1024,128], index: 2, kind: output, shape index: {0}]   ;;  %s1372_s3 = inlined_call_operand.vmem [shape: f32[2,128], index: 3, kind: output, shape index: {1}]  }
   0x1 LB: > { %s1124_s13 = sadd.s32 4294967295, %s1095_s12   ;;  %p935_p0 = scmp.ge.s32.totalorder %s1095_s12, 1  ;;  %s1095_s12 = sphi %s1118_s12, %s14_s12  }
   0x2   : > { %p136_p1 = scmp.lt.s32.totalorder %s1095_s12, 5 }
   0x4   : > { %p137_p2 = pnand %p935_p0, %p136_p1 }
   0x5   : > { %s936_s14 = sshll.u32 (!%p137_p2), %s1124_s13, 5  ;;  %p940_p4 = scmp.ne.s32.totalorder (!%p137_p2), %s1124_s13, 0 }
   0x6   : > { %140 = sbr.rel (%p137_p2) target bundleno = 349 (0x15d), region = 28  ;;  %p161_p3 = scmp.lt.s32.totalorder (!%p137_p2), %s936_s14, 127 }
   0xd   : > { %s1374_s14 = smov (!%p161_p3, %s936_s14), 127  ;;  %176 = sbr.rel (%p940_p4) target bundleno = 20 (0x14), region = 32 }
   0xe   : > { %s937_s15 = sshll.u32 %s1374_s14, 2  ;;  %s939_s16 = sshll.u32 %s1374_s14, 3  ;;  %v1097_v0 = vmov (!%p940_p4), 0.0  }
   0xf   : > { %s1132_s19 = scalar_lea.vmem %s1369_s0, %s937_s15  ;;  %s1137_s22 = scalar_lea.vmem %s1371_s2, %s939_s16  ;;  %177 = vst [vmem:[%s1372_s3] sm:$0x3] (!%p940_p4), %v1097_v0 }
  0x14 PF: > { %v1065_v1 = vld [vmem:[%s1370_s1] sm:$0xff]   ;;  %v1066_v2 = vld [vmem:[%s1370_s1 + $0x8] sm:$0xff]   ;;  %v1067_v3 = vld [vmem:[%s1370_s1 + $0x10] sm:$0xff]   ;;  %v563_v25 = vlaneseq  ;;  %s965_s16 = sshll.u32 %s1124_s13, 8 }
  0x15   : > { %992 = vmatprep.subr.bf16.mxu0 %v1065_v1  ;;  %1040 = vmatprep.subr.bf16.mxu1 %v1065_v1  ;;  %v1068_v4 = vld [vmem:[%s1370_s1 + $0x18] sm:$0xff]   ;;  %v1073_v5 = vld [vmem:[%s1132_s19] sm:$0xff]   ;;  %v1070_v7 = vld [vmem:[%s1370_s1 + $0x28] sm:$0xff]   ;;  %v1186_v27 = vstv %s965_s16 }
  0x16   : > { %993 = vmatpush3.bf16.msra.mxu0 %v1065_v1  ;;  %1048 = vmatpush3.bf16.msra.mxu1 %v1065_v1  ;;  %v1069_v6 = vld [vmem:[%s1370_s1 + $0x20] sm:$0xff]   ;;  %v1071_v9 = vld [vmem:[%s1370_s1 + $0x30] sm:$0xff]   ;;  %v1072_v10 = vld [vmem:[%s1370_s1 + $0x38] sm:$0xff]   ;;  %v1183_v26 = vshrl.u32 %v563_v25, 7 }
  0x17   : > { %994 = vmatprep.subr.bf16.mxu0 %v1066_v2  ;;  %1041 = vmatprep.subr.bf16.mxu1 %v1066_v2  ;;  %v1081_v8 = vld [vmem:[%s1132_s19 + $0x40] sm:$0xff]   ;;  %v1074_v11 = vld [vmem:[%s1132_s19 + $0x8] sm:$0xff]   ;;  %v1075_v13 = vld [vmem:[%s1132_s19 + $0x10] sm:$0xff]  }
  0x18   : > { %1008 = vmatprep.mubr.bf16.mxu0 %v1073_v5  ;;  %1024 = vmatprep.mubr.bf16.mxu1 %v1081_v8  ;;  %v1082_v12 = vld [vmem:[%s1132_s19 + $0x48] sm:$0xff]   ;;  %v1083_v14 = vld [vmem:[%s1132_s19 + $0x50] sm:$0xff]   ;;  %v1076_v15 = vld [vmem:[%s1132_s19 + $0x18] sm:$0xff]   ;;  %v566_v28 = vadd.s32 16, %v1183_v26  ;;  %v565_v29 = vadd.s32 8, %v1183_v26  ;;  %v598_v30 = vadd.s32 %v1186_v27, %v1183_v26  ;;  %v567_v31 = vadd.s32 24, %v1183_v26 }
  0x19   : > { %v1084_v16 = vld [vmem:[%s1132_s19 + $0x58] sm:$0xff]   ;;  %v1077_v17 = vld [vmem:[%s1132_s19 + $0x20] sm:$0xff]   ;;  %v1078_v19 = vld [vmem:[%s1132_s19 + $0x28] sm:$0xff]   ;;  %v568_v35 = vadd.s32 32, %v1183_v26  ;;  %v570_v37 = vadd.s32 48, %v1183_v26  ;;  %v569_v38 = vadd.s32 40, %v1183_v26 }
  0x1a   : > { %995 = vmatpush3.bf16.msra.mxu0 %v1066_v2  ;;  %1049 = vmatpush3.bf16.msra.mxu1 %v1066_v2  ;;  %v1085_v18 = vld [vmem:[%s1132_s19 + $0x60] sm:$0xff]   ;;  %v1086_v20 = vld [vmem:[%s1132_s19 + $0x68] sm:$0xff]   ;;  %v1079_v21 = vld [vmem:[%s1132_s19 + $0x30] sm:$0xff]   ;;  %v600_v32 = vadd.s32 %v1186_v27, %v566_v28  ;;  %v599_v33 = vadd.s32 %v1186_v27, %v565_v29  ;;  %vm630_vm0 = vcmp.lt.s32.totalorder %v598_v30, 1024  ;;  %v601_v34 = vadd.s32 %v1186_v27, %v567_v31 }
  0x1b   : > { %996 = vmatprep.subr.bf16.mxu0 %v1067_v3  ;;  %1042 = vmatprep.subr.bf16.mxu1 %v1067_v3  ;;  %v1087_v22 = vld [vmem:[%s1132_s19 + $0x70] sm:$0xff]   ;;  %v1080_v23 = vld [vmem:[%s1132_s19 + $0x38] sm:$0xff]   ;;  %v571_v44 = vadd.s32 56, %v1183_v26  ;;  %v602_v47 = vadd.s32 %v1186_v27, %v568_v35  ;;  %v604_v51 = vadd.s32 %v1186_v27, %v570_v37  ;;  %v603_v52 = vadd.s32 %v1186_v27, %v569_v38 }
  0x1c   : > { %v1088_v24 = vld [vmem:[%s1132_s19 + $0x78] sm:$0xff]   ;;  %vm632_vm1 = vcmp.lt.s32.totalorder %v600_v32, 1024  ;;  %vm631_vm2 = vcmp.lt.s32.totalorder %v599_v33, 1024  ;;  %vm633_vm3 = vcmp.lt.s32.totalorder %v601_v34, 1024  ;;  %v572_v58 = vadd.s32 64, %v1183_v26 }
  0x1d   : > { %v605_v57 = vadd.s32 %v1186_v27, %v571_v44  ;;  %vm634_vm4 = vcmp.lt.s32.totalorder %v602_v47, 1024  ;;  %vm636_vm5 = vcmp.lt.s32.totalorder %v604_v51, 1024  ;;  %vm635_vm6 = vcmp.lt.s32.totalorder %v603_v52, 1024 }
  0x1e   : > { %997 = vmatpush3.bf16.msra.mxu0 %v1067_v3  ;;  %1050 = vmatpush3.bf16.msra.mxu1 %v1067_v3  ;;  %v574_v63 = vadd.s32 80, %v1183_v26  ;;  %v573_v5 = vadd.s32 72, %v1183_v26  ;;  %v576_v31 = vadd.s32 96, %v1183_v26  ;;  %v578_v33 = vadd.s32 112, %v1183_v26 }
  0x1f   : > { %998 = vmatprep.subr.bf16.mxu0 %v1068_v4  ;;  %1043 = vmatprep.subr.bf16.mxu1 %v1068_v4  ;;  %vm637_vm7 = vcmp.lt.s32.totalorder %v605_v57, 1024  ;;  %v577_v34 = vadd.s32 104, %v1183_v26  ;;  %v580_v47 = vadd.s32 128, %v1183_v26 }
  0x22   : > { %999 = vmatpush3.bf16.msra.mxu0 %v1068_v4  ;;  %1051 = vmatpush3.bf16.msra.mxu1 %v1068_v4 }
  0x23   : > { %1000 = vmatprep.subr.bf16.mxu0 %v1069_v6  ;;  %1044 = vmatprep.subr.bf16.mxu1 %v1069_v6 }
  0x26   : > { %1001 = vmatpush3.bf16.msra.mxu0 %v1069_v6  ;;  %1052 = vmatpush3.bf16.msra.mxu1 %v1069_v6 }
  0x27   : > { %1002 = vmatprep.subr.bf16.mxu0 %v1070_v7  ;;  %1045 = vmatprep.subr.bf16.mxu1 %v1070_v7 }
  0x2a   : > { %1003 = vmatpush3.bf16.msra.mxu0 %v1070_v7  ;;  %1053 = vmatpush3.bf16.msra.mxu1 %v1070_v7 }
  0x2b   : > { %1004 = vmatprep.subr.bf16.mxu0 %v1071_v9  ;;  %1046 = vmatprep.subr.bf16.mxu1 %v1071_v9 }
  0x2e   : > { %1005 = vmatpush3.bf16.msra.mxu0 %v1071_v9  ;;  %1054 = vmatpush3.bf16.msra.mxu1 %v1071_v9  ;;  %v606_v9 = vadd.s32 %v1186_v27, %v572_v58  ;;  %v612_v58 = vadd.s32 %v1186_v27, %v578_v33 }
  0x2f   : > { %1006 = vmatprep.subr.bf16.mxu0 %v1072_v10  ;;  %1047 = vmatprep.subr.bf16.mxu1 %v1072_v10 }
  0x30   : > { %vm638_vm8 = vcmp.lt.s32.totalorder %v606_v9, 1024  ;;  %vm644_vm13 = vcmp.lt.s32.totalorder %v612_v58, 1024  ;;  %v582_v9 = vadd.s32 144, %v1183_v26 }
  0x32   : > { %1007 = vmatpush3.bf16.msra.mxu0 %v1072_v10  ;;  %1055 = vmatpush3.bf16.msra.mxu1 %v1072_v10  ;;  %v575_v10 = vadd.s32 88, %v1183_v26  ;;  %v616_v33 = vadd.s32 %v1186_v27, %v582_v9 }
  0x34   : > { %v609_v25 = vadd.s32 %v1186_v27, %v575_v10 }
  0x35   : > { %1009 = vmatmul.mubr.bf16.vlgmr.msra.gmra.mrb[0].mxu0 %v1074_v11  ;;  %1025 = vmatmul.mubr.bf16.vlgmr.msra.gmra.mrb[0].mxu1 %v1082_v12 }
  0x36   : > { %1012 = vmatprep.mubr.bf16.mxu0 %v1075_v13  ;;  %1028 = vmatprep.mubr.bf16.mxu1 %v1083_v14  ;;  %vm641_vm11 = vcmp.lt.s32.totalorder %v609_v25, 1024 }
  0x3d   : > { %1013 = vmatmul.mubr.bf16.gmra.mrb[4].mxu0 %v1076_v15  ;;  %1029 = vmatmul.mubr.bf16.gmra.mrb[4].mxu1 %v1084_v16 }
  0x3e   : > { %1016 = vmatprep.mubr.bf16.mxu0 %v1077_v17  ;;  %1032 = vmatprep.mubr.bf16.mxu1 %v1085_v18 }
  0x45   : > { %1017 = vmatmul.mubr.bf16.gmra.mrb[8].mxu0 %v1078_v19  ;;  %1033 = vmatmul.mubr.bf16.gmra.mrb[8].mxu1 %v1086_v20  ;;  %v608_v19 = vadd.s32 %v1186_v27, %v574_v63 }
  0x46   : > { %1020 = vmatprep.mubr.bf16.mxu0 %v1079_v21  ;;  %1036 = vmatprep.mubr.bf16.mxu1 %v1087_v22 }
  0x47   : > { %vm640_vm9 = vcmp.lt.s32.totalorder %v608_v19, 1024 }
  0x4d   : > { %1021 = vmatmul.mubr.bf16.gmra.mrb[12].mxu0 %v1080_v23  ;;  %1037 = vmatmul.mubr.bf16.gmra.mrb[12].mxu1 %v1088_v24  ;;  %v607_v23 = vadd.s32 %v1186_v27, %v573_v5 }
  0x4f   : > { %vm639_vm10 = vcmp.lt.s32.totalorder %v607_v23, 1024 }
 0x108   : > { %v1010_v36 = vpop.f32.mrb[0].mxu0  ;;  %v1199_v39 = vpop.f32.mrb[0].mxu1 }
 0x109   : > { %533 = vst [vmem:[%s1137_s22 + $0x10] sm:$0xff] %v1010_v36  ;;  %v404_v40 = vpop.f32.mrb[1].mxu0  ;;  %549 = vst [vmem:[%s1137_s22 + $0x90] sm:$0xff] %v1199_v39  ;;  %v1204_v41 = vpop.f32.mrb[1].mxu1  ;;  %v728_v49 = vsel %vm632_vm1, %v1010_v36, 0.0 }
 0x10a   : > { %531 = vst [vmem:[%s1137_s22] sm:$0xff] %v404_v40  ;;  %v726_v42 = vsel %vm630_vm0, %v404_v40, 0.0  ;;  %v1011_v43 = vpop.f32.mrb[2].mxu0  ;;  %547 = vst [vmem:[%s1137_s22 + $0x80] sm:$0xff] %v1204_v41  ;;  %v1210_v45 = vpop.f32.mrb[2].mxu1  ;;  %v797_v59 = vmul.f32 %v728_v49, %v728_v49 }
 0x10b   : > { %534 = vst [vmem:[%s1137_s22 + $0x18] sm:$0xff] %v1011_v43  ;;  %v407_v46 = vpop.f32.mrb[3].mxu0  ;;  %550 = vst [vmem:[%s1137_s22 + $0x98] sm:$0xff] %v1210_v45  ;;  %v1216_v48 = vpop.f32.mrb[3].mxu1  ;;  %v795_v53 = vmul.f32 %v726_v42, %v726_v42  ;;  %v729_v56 = vsel %vm633_vm3, %v1011_v43, 0.0 }
 0x10c   : > { %532 = vst [vmem:[%s1137_s22 + $0x8] sm:$0xff] %v407_v46  ;;  %v727_v50 = vsel %vm631_vm2, %v407_v46, 0.0  ;;  %548 = vst [vmem:[%s1137_s22 + $0x88] sm:$0xff] %v1216_v48  ;;  %v798_v1 = vmul.f32 %v729_v56, %v729_v56  ;;  %v579_v46 = vadd.s32 120, %v1183_v26  ;;  %vm648_vm2 = vcmp.lt.s32.totalorder %v616_v33, 1024 }
 0x10d   : > { %v758_v54 = vadd.f32 %v727_v50, %v726_v42  ;;  %v796_v55 = vmul.f32 %v727_v50, %v727_v50 }
 0x10f   : > { %v759_v60 = vadd.f32 %v758_v54, %v728_v49  ;;  %v827_v61 = vadd.f32 %v796_v55, %v795_v53  ;;  %v610_v54 = vadd.s32 %v1186_v27, %v576_v31 }
 0x110   : > { %v1014_v62 = vpop.f32.mrb[4].mxu0  ;;  %v1228_v0 = vpop.f32.mrb[4].mxu1 }
 0x111   : > { %v828_v2 = vadd.f32 %v827_v61, %v797_v59  ;;  %537 = vst [vmem:[%s1137_s22 + $0x30] sm:$0xff] %v1014_v62  ;;  %v420_v3 = vpop.f32.mrb[5].mxu0  ;;  %v760_v4 = vadd.f32 %v759_v60, %v729_v56  ;;  %553 = vst [vmem:[%s1137_s22 + $0xb0] sm:$0xff] %v1228_v0  ;;  %v1234_v6 = vpop.f32.mrb[5].mxu1  ;;  %v732_v17 = vsel %vm636_vm5, %v1014_v62, 0.0  ;;  %v611_v59 = vadd.s32 %v1186_v27, %v577_v34 }
 0x112   : > { %535 = vst [vmem:[%s1137_s22 + $0x20] sm:$0xff] %v420_v3  ;;  %v730_v7 = vsel %vm634_vm4, %v420_v3, 0.0  ;;  %v1015_v8 = vpop.f32.mrb[6].mxu0  ;;  %551 = vst [vmem:[%s1137_s22 + $0xa0] sm:$0xff] %v1234_v6  ;;  %v1241_v11 = vpop.f32.mrb[6].mxu1  ;;  %v801_v28 = vmul.f32 %v732_v17, %v732_v17  ;;  %v581_v3 = vadd.s32 136, %v1183_v26 }
 0x113   : > { %v761_v12 = vadd.f32 %v760_v4, %v730_v7  ;;  %v799_v13 = vmul.f32 %v730_v7, %v730_v7  ;;  %v829_v14 = vadd.f32 %v828_v2, %v798_v1  ;;  %538 = vst [vmem:[%s1137_s22 + $0x38] sm:$0xff] %v1015_v8  ;;  %v423_v15 = vpop.f32.mrb[7].mxu0  ;;  %554 = vst [vmem:[%s1137_s22 + $0xb8] sm:$0xff] %v1241_v11  ;;  %v1246_v16 = vpop.f32.mrb[7].mxu1  ;;  %v733_v24 = vsel %vm637_vm7, %v1015_v8, 0.0 }
 0x114   : > { %536 = vst [vmem:[%s1137_s22 + $0x28] sm:$0xff] %v423_v15  ;;  %v731_v18 = vsel %vm635_vm6, %v423_v15, 0.0  ;;  %552 = vst [vmem:[%s1137_s22 + $0xa8] sm:$0xff] %v1246_v16  ;;  %v802_v36 = vmul.f32 %v733_v24, %v733_v24  ;;  %v613_v1 = vadd.s32 %v1186_v27, %v579_v46  ;;  %v614_v2 = vadd.s32 %v1186_v27, %v580_v47 }
 0x115   : > { %v830_v20 = vadd.f32 %v829_v14, %v799_v13  ;;  %v762_v21 = vadd.f32 %v761_v12, %v731_v18  ;;  %v800_v22 = vmul.f32 %v731_v18, %v731_v18  ;;  %vm642_vm12 = vcmp.lt.s32.totalorder %v610_v54, 1024 }
 0x116   : > { %vm643_vm14 = vcmp.lt.s32.totalorder %v611_v59, 1024  ;;  %vm645_vm15 = vcmp.lt.s32.totalorder %v613_v1, 1024  ;;  %vm646_vm0 = vcmp.lt.s32.totalorder %v614_v2, 1024 }
 0x117   : > { %v763_v29 = vadd.f32 %v762_v21, %v732_v17  ;;  %v831_v30 = vadd.f32 %v830_v20, %v800_v22  ;;  %v583_v17 = vadd.s32 152, %v1183_v26  ;;  %v615_v21 = vadd.s32 %v1186_v27, %v581_v3 }
 0x118   : > { %v1018_v32 = vpop.f32.mrb[8].mxu0  ;;  %v1259_v35 = vpop.f32.mrb[8].mxu1 }
 0x119   : > { %v832_v37 = vadd.f32 %v831_v30, %v801_v28  ;;  %541 = vst [vmem:[%s1137_s22 + $0x50] sm:$0xff] %v1018_v32  ;;  %v436_v38 = vpop.f32.mrb[9].mxu0  ;;  %v764_v40 = vadd.f32 %v763_v29, %v733_v24  ;;  %557 = vst [vmem:[%s1137_s22 + $0xd0] sm:$0xff] %v1259_v35  ;;  %v1264_v42 = vpop.f32.mrb[9].mxu1  ;;  %v736_v56 = vsel %vm640_vm9, %v1018_v32, 0.0  ;;  %v584_v29 = vadd.s32 160, %v1183_v26 }
 0x11a   : > { %539 = vst [vmem:[%s1137_s22 + $0x40] sm:$0xff] %v436_v38  ;;  %v734_v43 = vsel %vm638_vm8, %v436_v38, 0.0  ;;  %v1019_v44 = vpop.f32.mrb[10].mxu0  ;;  %555 = vst [vmem:[%s1137_s22 + $0xc0] sm:$0xff] %v1264_v42  ;;  %v1272_v49 = vpop.f32.mrb[10].mxu1  ;;  %v805_v4 = vmul.f32 %v736_v56, %v736_v56  ;;  %v617_v38 = vadd.s32 %v1186_v27, %v583_v17  ;;  %vm647_vm1 = vcmp.lt.s32.totalorder %v615_v21, 1024 }
 0x11b   : > { %v765_v50 = vadd.f32 %v764_v40, %v734_v43  ;;  %v803_v51 = vmul.f32 %v734_v43, %v734_v43  ;;  %v833_v52 = vadd.f32 %v832_v37, %v802_v36  ;;  %542 = vst [vmem:[%s1137_s22 + $0x58] sm:$0xff] %v1019_v44  ;;  %v439_v53 = vpop.f32.mrb[11].mxu0  ;;  %558 = vst [vmem:[%s1137_s22 + $0xd8] sm:$0xff] %v1272_v49  ;;  %v1278_v55 = vpop.f32.mrb[11].mxu1  ;;  %v737_v63 = vsel %vm641_vm11, %v1019_v44, 0.0 }
 0x11c   : > { %540 = vst [vmem:[%s1137_s22 + $0x48] sm:$0xff] %v439_v53  ;;  %v735_v57 = vsel %vm639_vm10, %v439_v53, 0.0  ;;  %556 = vst [vmem:[%s1137_s22 + $0xc8] sm:$0xff] %v1278_v55  ;;  %v806_v12 = vmul.f32 %v737_v63, %v737_v63  ;;  %v742_v43 = vsel %vm646_vm0, %v1204_v41, 0.0  ;;  %v585_v44 = vadd.s32 168, %v1183_v26 }
 0x11d   : > { %v834_v60 = vadd.f32 %v833_v52, %v803_v51  ;;  %v766_v61 = vadd.f32 %v765_v50, %v735_v57  ;;  %v804_v62 = vmul.f32 %v735_v57, %v735_v57  ;;  %v618_v51 = vadd.s32 %v1186_v27, %v584_v29 }
 0x11e   : > { %v586_v52 = vadd.s32 176, %v1183_v26  ;;  %v587_v53 = vadd.s32 184, %v1183_v26  ;;  %v811_v58 = vmul.f32 %v742_v43, %v742_v43  ;;  %vm649_vm3 = vcmp.lt.s32.totalorder %v617_v38, 1024 }
 0x11f   : > { %v767_v5 = vadd.f32 %v766_v61, %v736_v56  ;;  %v835_v7 = vadd.f32 %v834_v60, %v804_v62  ;;  %v743_v41 = vsel %vm647_vm1, %v1216_v48, 0.0  ;;  %v619_v59 = vadd.s32 %v1186_v27, %v585_v44 }
 0x120   : > { %v1022_v8 = vpop.f32.mrb[12].mxu0  ;;  %v1292_v10 = vpop.f32.mrb[12].mxu1  ;;  %vm650_vm4 = vcmp.lt.s32.totalorder %v618_v51, 1024  ;;  %v588_v62 = vadd.s32 192, %v1183_v26  ;;  %v620_v1 = vadd.s32 %v1186_v27, %v586_v52  ;;  %vm865_vm0 = vcmask 1040384  }
 0x121   : > { %v836_v13 = vadd.f32 %v835_v7, %v805_v4  ;;  %545 = vst [vmem:[%s1137_s22 + $0x70] sm:$0xff] %v1022_v8  ;;  %v452_v14 = vpop.f32.mrb[13].mxu0  ;;  %v768_v15 = vadd.f32 %v767_v5, %v737_v63  ;;  %561 = vst [vmem:[%s1137_s22 + $0xf0] sm:$0xff] %v1292_v10  ;;  %v1298_v18 = vpop.f32.mrb[13].mxu1  ;;  %v740_v31 = vsel %vm644_vm13, %v1022_v8, 0.0  ;;  %v744_v63 = vsel %vm648_vm2, %v1199_v39, 0.0 }
 0x122   : > { %543 = vst [vmem:[%s1137_s22 + $0x60] sm:$0xff] %v452_v14  ;;  %v738_v19 = vsel %vm642_vm12, %v452_v14, 0.0  ;;  %v1023_v20 = vpop.f32.mrb[14].mxu0  ;;  %559 = vst [vmem:[%s1137_s22 + $0xe0] sm:$0xff] %v1298_v18  ;;  %v1304_v22 = vpop.f32.mrb[14].mxu1  ;;  %v809_v46 = vmul.f32 %v740_v31, %v740_v31  ;;  %v812_v4 = vmul.f32 %v743_v41, %v743_v41  ;;  %v621_v5 = vadd.s32 %v1186_v27, %v587_v53 }
 0x123   : > { %v769_v23 = vadd.f32 %v768_v15, %v738_v19  ;;  %v807_v24 = vmul.f32 %v738_v19, %v738_v19  ;;  %v837_v25 = vadd.f32 %v836_v13, %v806_v12  ;;  %546 = vst [vmem:[%s1137_s22 + $0x78] sm:$0xff] %v1023_v20  ;;  %v455_v28 = vpop.f32.mrb[15].mxu0  ;;  %562 = vst [vmem:[%s1137_s22 + $0xf8] sm:$0xff] %v1304_v22  ;;  %v1310_v30 = vpop.f32.mrb[15].mxu1  ;;  %v741_v40 = vsel %vm645_vm15, %v1023_v20, 0.0 }
 0x124   : > { %544 = vst [vmem:[%s1137_s22 + $0x68] sm:$0xff] %v455_v28  ;;  %v739_v32 = vsel %vm643_vm14, %v455_v28, 0.0  ;;  %560 = vst [vmem:[%s1137_s22 + $0xe8] sm:$0xff] %v1310_v30  ;;  %v810_v54 = vmul.f32 %v741_v40, %v741_v40  ;;  %v745_v7 = vsel %vm649_vm3, %v1210_v45, 0.0  ;;  %v746_v48 = vsel %vm650_vm4, %v1234_v6, 0.0 }
 0x125   : > { %v838_v34 = vadd.f32 %v837_v25, %v807_v24  ;;  %v770_v36 = vadd.f32 %v769_v23, %v739_v32  ;;  %v808_v37 = vmul.f32 %v739_v32, %v739_v32  ;;  %vm651_vm5 = vcmp.lt.s32.totalorder %v619_v59, 1024 }
 0x126   : > { %v589_v8 = vadd.s32 200, %v1183_v26  ;;  %v813_v9 = vmul.f32 %v744_v63, %v744_v63  ;;  %v622_v14 = vadd.s32 %v1186_v27, %v588_v62  ;;  %vm652_vm6 = vcmp.lt.s32.totalorder %v620_v1, 1024 }
 0x127   : > { %v771_v47 = vadd.f32 %v770_v36, %v740_v31  ;;  %v839_v50 = vadd.f32 %v838_v34, %v808_v37  ;;  %v590_v39 = vadd.s32 208, %v1183_v26  ;;  %v591_v15 = vadd.s32 216, %v1183_v26 }
 0x128   : > { %v814_v17 = vmul.f32 %v745_v7, %v745_v7  ;;  %v815_v21 = vmul.f32 %v746_v48, %v746_v48  ;;  %vm653_vm7 = vcmp.lt.s32.totalorder %v621_v5, 1024  ;;  %v747_v45 = vsel %vm651_vm5, %v1246_v16, 0.0 }
 0x129   : > { %v840_v56 = vadd.f32 %v839_v50, %v809_v46  ;;  %v772_v57 = vadd.f32 %v771_v47, %v741_v40  ;;  %v623_v6 = vadd.s32 %v1186_v27, %v589_v8  ;;  %vm654_vm8 = vcmp.lt.s32.totalorder %v622_v14, 1024 }
 0x12a   : > { %v592_v25 = vadd.s32 224, %v1183_v26  ;;  %v748_v28 = vsel %vm652_vm6, %v1228_v0, 0.0  ;;  %v624_v29 = vadd.s32 %v1186_v27, %v590_v39  ;;  %v816_v33 = vmul.f32 %v747_v45, %v747_v45 }
 0x12b   : > { %v773_v60 = vadd.f32 %v772_v57, %v742_v43  ;;  %v841_v61 = vadd.f32 %v840_v56, %v810_v54  ;;  %v625_v34 = vadd.s32 %v1186_v27, %v591_v15  ;;  %v749_v36 = vsel %vm653_vm7, %v1241_v11, 0.0 }
 0x12c   : > { %v750_v16 = vsel %vm654_vm8, %v1264_v42, 0.0  ;;  %vm655_vm9 = vcmp.lt.s32.totalorder %v623_v6, 1024  ;;  %v593_v37 = vadd.s32 232, %v1183_v26  ;;  %v817_v38 = vmul.f32 %v748_v28, %v748_v28 }
 0x12d   : > { %v842_v2 = vadd.f32 %v841_v61, %v811_v58  ;;  %v774_v3 = vadd.f32 %v773_v60, %v743_v41  ;;  %v626_v44 = vadd.s32 %v1186_v27, %v592_v25  ;;  %vm656_vm10 = vcmp.lt.s32.totalorder %v624_v29, 1024  ;;  %v864_v29 = vld [vmem:[%s1372_s3] sm:$0x3] }
 0x12e   : > { %v594_v0 = vadd.s32 240, %v1183_v26  ;;  %v818_v46 = vmul.f32 %v749_v36, %v749_v36  ;;  %v819_v51 = vmul.f32 %v750_v16, %v750_v16  ;;  %vm657_vm11 = vcmp.lt.s32.totalorder %v625_v34, 1024 }
 0x12f   : > { %v775_v12 = vadd.f32 %v774_v3, %v744_v63  ;;  %v843_v13 = vadd.f32 %v842_v2, %v812_v4  ;;  %v751_v11 = vsel %vm655_vm9, %v1278_v55, 0.0  ;;  %v595_v42 = vadd.s32 248, %v1183_v26 }
 0x130   : > { %vm658_vm12 = vcmp.lt.s32.totalorder %v626_v44, 1024  ;;  %v627_v54 = vadd.s32 %v1186_v27, %v593_v37  ;;  %v752_v56 = vsel %vm656_vm10, %v1259_v35, 0.0  ;;  %v628_v57 = vadd.s32 %v1186_v27, %v594_v0 }
 0x131   : > { %v844_v19 = vadd.f32 %v843_v13, %v813_v9  ;;  %v776_v20 = vadd.f32 %v775_v12, %v745_v7  ;;  %v820_v59 = vmul.f32 %v751_v11, %v751_v11  ;;  %v753_v60 = vsel %vm657_vm11, %v1272_v49, 0.0 }
 0x132   : > { %v754_v61 = vsel %vm658_vm12, %v1298_v18, 0.0  ;;  %v629_v55 = vadd.s32 %v1186_v27, %v595_v42  ;;  %v821_v62 = vmul.f32 %v752_v56, %v752_v56  ;;  %vm659_vm13 = vcmp.lt.s32.totalorder %v627_v54, 1024 }
 0x133   : > { %v777_v23 = vadd.f32 %v776_v20, %v746_v48  ;;  %v845_v24 = vadd.f32 %v844_v19, %v814_v17  ;;  %vm660_vm14 = vcmp.lt.s32.totalorder %v628_v57, 1024  ;;  %v822_v1 = vmul.f32 %v753_v60, %v753_v60 }
 0x134   : > { %v823_v35 = vmul.f32 %v754_v61, %v754_v61  ;;  %v755_v4 = vsel %vm659_vm13, %v1310_v30, 0.0  ;;  %vm661_vm15 = vcmp.lt.s32.totalorder %v629_v55, 1024  ;;  %v756_v49 = vsel %vm660_vm14, %v1292_v10, 0.0 }
 0x135   : > { %v846_v31 = vadd.f32 %v845_v24, %v815_v21  ;;  %v778_v32 = vadd.f32 %v777_v23, %v747_v45  ;;  %v824_v8 = vmul.f32 %v755_v4, %v755_v4  ;;  %v757_v27 = vsel %vm661_vm15, %v1304_v22, 0.0 }
 0x136   : > { %v825_v9 = vmul.f32 %v756_v49, %v756_v49  ;;  %v826_v14 = vmul.f32 %v757_v27, %v757_v27 }
 0x137   : > { %v779_v40 = vadd.f32 %v778_v32, %v748_v28  ;;  %v847_v43 = vadd.f32 %v846_v31, %v816_v33 }
 0x139   : > { %v848_v47 = vadd.f32 %v847_v43, %v817_v38  ;;  %v780_v50 = vadd.f32 %v779_v40, %v749_v36 }
 0x13b   : > { %v781_v52 = vadd.f32 %v780_v50, %v750_v16  ;;  %v849_v53 = vadd.f32 %v848_v47, %v818_v46 }
 0x13d   : > { %v850_v58 = vadd.f32 %v849_v53, %v819_v51  ;;  %v782_v41 = vadd.f32 %v781_v52, %v751_v11 }
 0x13f   : > { %v783_v26 = vadd.f32 %v782_v41, %v752_v56  ;;  %v851_v63 = vadd.f32 %v850_v58, %v820_v59 }
 0x141   : > { %v852_v2 = vadd.f32 %v851_v63, %v821_v62  ;;  %v784_v3 = vadd.f32 %v783_v26, %v753_v60 }
 0x143   : > { %v785_v5 = vadd.f32 %v784_v3, %v754_v61  ;;  %v853_v7 = vadd.f32 %v852_v2, %v822_v1 }
 0x145   : > { %v854_v48 = vadd.f32 %v853_v7, %v823_v35  ;;  %v786_v18 = vadd.f32 %v785_v5, %v755_v4 }
 0x147   : > { %v787_v12 = vadd.f32 %v786_v18, %v756_v49  ;;  %v855_v13 = vadd.f32 %v854_v48, %v824_v8 }
 0x149   : > { %v788_v39 = vadd.f32 %v787_v12, %v757_v27  ;;  %v856_v15 = vadd.f32 %v855_v13, %v825_v9 }
 0x14b   : > { %v789_v17 = vrot.slane %v788_v39, 4  ;;  %v857_v19 = vadd.f32 %v856_v15, %v826_v14 }
 0x14d   : > { %v790_v20 = vadd.f32 %v789_v17, %v788_v39  ;;  %v858_v30 = vrot.slane %v857_v19, 4 }
 0x14f   : > { %v791_v21 = vrot.slane %v790_v20, 2  ;;  %v859_v45 = vadd.f32 %v858_v30, %v857_v19 }
 0x151   : > { %v792_v6 = vadd.f32 %v791_v21, %v790_v20  ;;  %v860_v23 = vrot.slane %v859_v45, 2 }
 0x153   : > { %v793_v10 = vrot.slane %v792_v6, 1  ;;  %v861_v24 = vadd.f32 %v860_v23, %v859_v45 }
 0x155   : > { %v862_v25 = vrot.slane %v861_v24, 1  ;;  %v794_v28 = vadd.f32 %v793_v10, %v792_v6 }
 0x157   : > { %v863_v22 = vadd.f32 %v862_v25, %v861_v24 }
 0x159   : > { %v866_v31 = vsel %vm865_vm0, %v794_v28, %v863_v22 }
 0x15a   : > { %v867_v32 = vadd.f32 %v866_v31, %v864_v29 }
 0x15c   : > { %868 = vst [vmem:[%s1372_s3] sm:$0x3] %v867_v32 }
 0x15d PF: > { %s14_s12 = sadd.s32 1, %s1095_s12  }
 0x15e   : > { %p11_p5 = scmp.ge.s32.totalorder %s14_s12, 6  }
 0x160   :  { %13 = sbr.rel (!%p11_p5) target bundleno = 1 (0x1), region = 70 }

// kernel: bottleneck_forward.11
= control target key start
LH: loop header
LB: loop body
LE: loop exit
PB: predicated region body
PF: predicated region fallthrough
CT: control target
= control target key end

     0   :  { %8 = vsyncpa [#allocation3], 0  ;;  %s1047_s0 = inlined_call_operand.vmem [shape: f32[1024,128], index: 0, kind: input, shape index: {}]   ;;  %s1048_s1 = inlined_call_operand.vmem [shape: f32[2,128], index: 1, kind: input, shape index: {}]   ;;  %s1049_s2 = inlined_call_operand.vmem [shape: f32[1024,128], index: 2, kind: input, shape index: {}]   ;;  %s1050_s3 = inlined_call_operand.hbm [shape: f32[1024,128], index: 3, kind: output, shape index: {}]  }
   0x1   :  { %10 = vsyncpa [#allocation3 + $0x1], 0  ;;  %s757_s12 = smov 0   ;;  %s759_s13 = smov 0  }
   0x2   :  { %s761_s14 = smov 0   ;;  %s763_s15 = smov 0  }
   0x3 LB: > { %s778_s16 = sadd.s32 4294967295, %s732_s15   ;;  %s612_s17 = sadd.s32 4294967294, %s732_s15   ;;  %s732_s15 = sphi %s763_s15, %s1056_s15   ;;  %s728_s14 = sphi %s761_s14, %s1055_s14   ;;  %s724_s13 = sphi %s759_s13, %s1054_s13   ;;  %s720_s12 = sphi %s757_s12, %s1053_s12  }
   0x4   : > { %s782_s18 = sadd.s32 1, %s732_s15   ;;  %s96_s19 = sadd.s32 1, %s728_s14 }
   0x5   : > { %s93_s20 = ssub.s32 %s732_s15, %s782_s18  ;;  %p106_p0 = scmp.ne.s32.totalorder %s728_s14, %s724_s13 }
   0x6   : > { %p94_p1 = scmp.eq.s32.totalorder %s93_s20, 0  ;;  %p107_p2 = scmp.eq.s32.totalorder %s778_s16, 3 }
   0x7   : > { %p112_p3 = scmp.ne.s32.totalorder %s724_s13, %s720_s12  ;;  %p113_p4 = scmp.eq.s32.totalorder %s612_s17, 3 }
   0x8   : > { %s793_s21 = scalar_select %p94_p1, %s728_s14, %s96_s19  }
   0x9   : > { %p795_p5 = por %p107_p2, %p106_p0  ;;  %p799_p6 = por %p113_p4, %p112_p3 }
   0xa   : > { %p615_p7 = scmp.ge.s32.totalorder %s732_s15, 1  ;;  %p152_p8 = scmp.lt.s32.totalorder %s732_s15, 5 }
   0xc   : > { %p153_p9 = pnand %p615_p7, %p152_p8 }
   0xd   : > { %s617_s24 = sshll.u32 (!%p153_p9), %s778_s16, 5  ;;  %v809_v0 = vld [vmem:[%s1048_s1] ss:$0 sm:$0xff] (!%p153_p9)  ;;  %v820_v2 = vld [vmem:[%s1048_s1 + $0x1] ss:$0 sm:$0xff] (!%p153_p9)  ;;  %s178_s6 = sand.u32 (!%p153_p9), 1, %s724_s13  }
   0xe   : > { %156 = sbr.rel (%p153_p9) target bundleno = 101 (0x65), region = 32  ;;  %p182_p10 = scmp.lt.s32.totalorder (!%p153_p9), %s617_s24, 127 }
   0xf   : > { %s842_s10 = sshll.u32 (!%p153_p9), %s178_s6, 8  ;;  %s628_s17 = sshll.u32 (!%p153_p9), %s778_s16, 12 }
  0x10   : > { %s862_s11 = scalar_lea.vmem (!%p153_p9), [#allocation2], %s842_s10  ;;  %s1006_s16 = scalar_lea.sflag (!%p153_p9), [#allocation3], %s178_s6 }
  0x11   : > { %s538_s19 = sshll.u32 (!%p153_p9), %s862_s11, 4  ;;  %s734_s27 = smov (!%p153_p9), [#allocation2]   ;;  %s1000_s19 = int_to_ptr.vmem [resolvable:$true] %s538_s19 }
  0x12   : > { %s670_s26 = scalar_lea.vmem (!%p153_p9), %s1000_s19, 4096  ;;  %s674_s28 = sshll.u32 (!%p153_p9), %s734_s27, 4  ;;  %s675_s28 = int_to_ptr.vmem [resolvable:$false] %s674_s28 }
  0x13   : > { %p671_p11 = scmp.ne.s32.totalorder (!%p153_p9), %s1000_s19, %s670_s26  ;;  %s676_s29 = scalar_lea.vmem (!%p153_p9), %s675_s28, 8192 }
  0x14   : > { %p677_p0 = scmp.lt.s32.totalorder (!%p153_p9), %s1000_s19, %s675_s28  ;;  %p678_p1 = scmp.lt.s32.totalorder (!%p153_p9), %s676_s29, %s670_s26 }
  0x15   : > { %s1058_s24 = smov (!%p182_p10, %s617_s24), 127  ;;  %p672_p12 = pnand %p671_p11, %p795_p5 }
  0x16   : > { %s618_s25 = sshll.u32 %s1058_s24, 3  ;;  %p679_p2 = por %p678_p1, %p677_p0 }
  0x17   : > { %s814_s30 = scalar_lea.vmem %s1047_s0, %s618_s25  ;;  %s827_s9 = scalar_lea.vmem %s1049_s2, %s618_s25 }
  0x18   : > { %v194_v1 = vld [vmem:[%s814_s30] sm:$0xff]  ;;  %v195_v3 = vld [vmem:[%s814_s30 + $0x8] sm:$0xff]  ;;  %v196_v6 = vld [vmem:[%s814_s30 + $0x10] sm:$0xff]  ;;  %s998_s25 = scalar_lea.hbm %s1050_s3, %s628_s17  ;;  %p673_p13 = pneg %p672_p12 }
  0x19   : > { %v231_v4 = vmul.f32 %v809_v0, %v194_v1  ;;  %v232_v5 = vmul.f32 %v809_v0, %v195_v3  ;;  %v233_v7 = vmul.f32 %v809_v0, %v196_v6  ;;  %v197_v8 = vld [vmem:[%s814_s30 + $0x18] sm:$0xff]  ;;  %v198_v9 = vld [vmem:[%s814_s30 + $0x20] sm:$0xff]  ;;  %v199_v14 = vld [vmem:[%s814_s30 + $0x28] sm:$0xff] }
  0x1a   : > { %v234_v12 = vmul.f32 %v809_v0, %v197_v8  ;;  %v235_v13 = vmul.f32 %v809_v0, %v198_v9  ;;  %v396_v15 = vld [vmem:[%s827_s9] sm:$0xff]  ;;  %v397_v16 = vld [vmem:[%s827_s9 + $0x8] sm:$0xff]  ;;  %v236_v18 = vmul.f32 %v809_v0, %v199_v14  ;;  %v200_v19 = vld [vmem:[%s814_s30 + $0x30] sm:$0xff]  ;;  %p680_p3 = pnand %p679_p2, %p673_p13 }
  0x1b   : > { %v268_v10 = vadd.f32 %v820_v2, %v231_v4  ;;  %v269_v11 = vadd.f32 %v820_v2, %v232_v5  ;;  %v270_v17 = vadd.f32 %v820_v2, %v233_v7  ;;  %v398_v23 = vld [vmem:[%s827_s9 + $0x10] sm:$0xff]  ;;  %v237_v29 = vmul.f32 %v809_v0, %v200_v19  ;;  %v399_v33 = vld [vmem:[%s827_s9 + $0x18] sm:$0xff]  ;;  %v400_v34 = vld [vmem:[%s827_s9 + $0x20] sm:$0xff] }
  0x1c   : > { %v271_v24 = vadd.f32 %v820_v2, %v234_v12  ;;  %v272_v25 = vadd.f32 %v820_v2, %v235_v13  ;;  %v273_v28 = vadd.f32 %v820_v2, %v236_v18  ;;  %v401_v35 = vld [vmem:[%s827_s9 + $0x28] sm:$0xff]  ;;  %v201_v39 = vld [vmem:[%s814_s30 + $0x38] sm:$0xff]  ;;  %v202_v43 = vld [vmem:[%s814_s30 + $0x40] sm:$0xff] }
  0x1d   : > { %vm300_vm0 = vcmp.ge.f32.partialorder %v268_v10, 0.0  ;;  %v332_v20 = vmul.f32 0.01, %v268_v10  ;;  %vm301_vm1 = vcmp.ge.f32.partialorder %v269_v11, 0.0  ;;  %v333_v21 = vmul.f32 0.01, %v269_v11 }
  0x1e   : > { %vm302_vm2 = vcmp.ge.f32.partialorder %v270_v17, 0.0  ;;  %v334_v22 = vmul.f32 0.01, %v270_v17  ;;  %vm303_vm3 = vcmp.ge.f32.partialorder %v271_v24, 0.0  ;;  %v335_v37 = vmul.f32 0.01, %v271_v24 }
  0x1f   : > { %v364_v26 = vsel %vm300_vm0, %v268_v10, %v332_v20  ;;  %v365_v27 = vsel %vm301_vm1, %v269_v11, %v333_v21  ;;  %vm304_vm4 = vcmp.ge.f32.partialorder %v272_v25, 0.0  ;;  %v336_v38 = vmul.f32 0.01, %v272_v25  ;;  %v203_v48 = vld [vmem:[%s814_s30 + $0x48] sm:$0xff]  ;;  %v204_v53 = vld [vmem:[%s814_s30 + $0x50] sm:$0xff]  ;;  %v205_v62 = vld [vmem:[%s814_s30 + $0x58] sm:$0xff] }
  0x20   : > { %v428_v30 = vadd.f32 %v396_v15, %v364_v26  ;;  %v429_v31 = vadd.f32 %v397_v16, %v365_v27  ;;  %v366_v32 = vsel %vm302_vm2, %v270_v17, %v334_v22  ;;  %vm305_vm5 = vcmp.ge.f32.partialorder %v273_v28, 0.0  ;;  %v402_v56 = vld [vmem:[%s827_s9 + $0x30] sm:$0xff]  ;;  %v403_v7 = vld [vmem:[%s827_s9 + $0x38] sm:$0xff]  ;;  %v404_v10 = vld [vmem:[%s827_s9 + $0x40] sm:$0xff] }
  0x21   : > { %v430_v36 = vadd.f32 %v398_v23, %v366_v32  ;;  %v337_v42 = vmul.f32 0.01, %v273_v28  ;;  %v367_v45 = vsel %vm303_vm3, %v271_v24, %v335_v37  ;;  %v368_v46 = vsel %vm304_vm4, %v272_v25, %v336_v38  ;;  %v206_v13 = vld [vmem:[%s814_s30 + $0x60] sm:$0xff]  ;;  %v405_v17 = vld [vmem:[%s827_s9 + $0x48] sm:$0xff]  ;;  %v406_v22 = vld [vmem:[%s827_s9 + $0x50] sm:$0xff] }
  0x22   : > { %v460_v40 = vmax.f32 %v428_v30, 0.0  ;;  %v461_v41 = vmax.f32 %v429_v31, 0.0  ;;  %v274_v47 = vadd.f32 %v820_v2, %v237_v29  ;;  %v431_v49 = vadd.f32 %v399_v33, %v367_v45  ;;  %v207_v18 = vld [vmem:[%s814_s30 + $0x68] sm:$0xff]  ;;  %v208_v27 = vld [vmem:[%s814_s30 + $0x70] sm:$0xff]  ;;  %v209_v32 = vld [vmem:[%s814_s30 + $0x78] sm:$0xff] }
  0x23   : > { %v462_v44 = vmax.f32 %v430_v36, 0.0  ;;  %v432_v50 = vadd.f32 %v400_v34, %v368_v46  ;;  %v369_v51 = vsel %vm305_vm5, %v273_v28, %v337_v42  ;;  %v238_v52 = vmul.f32 %v809_v0, %v201_v39  ;;  %v210_v33 = vld [vmem:[%s814_s30 + $0x80] sm:$0xff]  ;;  %v407_v37 = vld [vmem:[%s827_s9 + $0x58] sm:$0xff]  ;;  %v211_v46 = vld [vmem:[%s814_s30 + $0x88] sm:$0xff] }
  0x24   : > { %492 = vst [vmem:[%s862_s11] sm:$0xff] %v460_v40  ;;  %493 = vst [vmem:[%s862_s11 + $0x8] sm:$0xff] %v461_v41  ;;  %v433_v54 = vadd.f32 %v401_v35, %v369_v51  ;;  %vm306_vm6 = vcmp.ge.f32.partialorder %v274_v47, 0.0  ;;  %v338_v55 = vmul.f32 0.01, %v274_v47  ;;  %v239_v57 = vmul.f32 %v809_v0, %v202_v43 }
  0x25   : > { %494 = vst [vmem:[%s862_s11 + $0x10] sm:$0xff] %v462_v44  ;;  %v463_v58 = vmax.f32 %v431_v49, 0.0  ;;  %v464_v59 = vmax.f32 %v432_v50, 0.0  ;;  %v275_v60 = vadd.f32 %v820_v2, %v238_v52  ;;  %v240_v61 = vmul.f32 %v809_v0, %v203_v48  ;;  %v408_v50 = vld [vmem:[%s827_s9 + $0x60] sm:$0xff]  ;;  %v409_v52 = vld [vmem:[%s827_s9 + $0x68] sm:$0xff] }
  0x26   : > { %v465_v63 = vmax.f32 %v433_v54, 0.0  ;;  %v370_v1 = vsel %vm306_vm6, %v274_v47, %v338_v55  ;;  %v276_v3 = vadd.f32 %v820_v2, %v239_v57  ;;  %v241_v4 = vmul.f32 %v809_v0, %v204_v53  ;;  %v212_v47 = vld [vmem:[%s814_s30 + $0x90] sm:$0xff] }
  0x27   : > { %495 = vst [vmem:[%s862_s11 + $0x18] sm:$0xff] %v463_v58  ;;  %496 = vst [vmem:[%s862_s11 + $0x20] sm:$0xff] %v464_v59  ;;  %v434_v5 = vadd.f32 %v402_v56, %v370_v1  ;;  %vm307_vm7 = vcmp.ge.f32.partialorder %v275_v60, 0.0  ;;  %v339_v6 = vmul.f32 0.01, %v275_v60  ;;  %v277_v8 = vadd.f32 %v820_v2, %v240_v61 }
  0x28   : > { %497 = vst [vmem:[%s862_s11 + $0x28] sm:$0xff] %v465_v63  ;;  %vm308_vm8 = vcmp.ge.f32.partialorder %v276_v3, 0.0  ;;  %v340_v9 = vmul.f32 0.01, %v276_v3  ;;  %v278_v11 = vadd.f32 %v820_v2, %v241_v4  ;;  %v242_v12 = vmul.f32 %v809_v0, %v205_v62  ;;  %v410_v63 = vld [vmem:[%s827_s9 + $0x70] sm:$0xff]  ;;  %v411_v4 = vld [vmem:[%s827_s9 + $0x78] sm:$0xff] }
  0x29   : > { %v466_v14 = vmax.f32 %v434_v5, 0.0  ;;  %v371_v15 = vsel %vm307_vm7, %v275_v60, %v339_v6  ;;  %vm309_vm9 = vcmp.ge.f32.partialorder %v277_v8, 0.0  ;;  %v341_v16 = vmul.f32 0.01, %v277_v8 }
  0x2a   : > { %v435_v19 = vadd.f32 %v403_v7, %v371_v15  ;;  %v372_v20 = vsel %vm308_vm8, %v276_v3, %v340_v9  ;;  %vm310_vm10 = vcmp.ge.f32.partialorder %v278_v11, 0.0  ;;  %v342_v21 = vmul.f32 0.01, %v278_v11  ;;  %v214_v15 = vld [vmem:[%s814_s30 + $0xa0] sm:$0xff] }
  0x2b   : > { %498 = vst [vmem:[%s862_s11 + $0x30] sm:$0xff] %v466_v14  ;;  %v436_v23 = vadd.f32 %v404_v10, %v372_v20  ;;  %v373_v24 = vsel %vm309_vm9, %v277_v8, %v341_v16  ;;  %v279_v25 = vadd.f32 %v820_v2, %v242_v12  ;;  %v243_v26 = vmul.f32 %v809_v0, %v206_v13  ;;  %v412_v8 = vld [vmem:[%s827_s9 + $0x80] sm:$0xff]  ;;  %v213_v14 = vld [vmem:[%s814_s30 + $0x98] sm:$0xff]  ;;  %v215_v20 = vld [vmem:[%s814_s30 + $0xa8] sm:$0xff] }
  0x2c   : > { %v467_v28 = vmax.f32 %v435_v19, 0.0  ;;  %v437_v29 = vadd.f32 %v405_v17, %v373_v24  ;;  %v374_v30 = vsel %vm310_vm10, %v278_v11, %v342_v21  ;;  %v244_v31 = vmul.f32 %v809_v0, %v207_v18  ;;  %v413_v19 = vld [vmem:[%s827_s9 + $0x88] sm:$0xff]  ;;  %v414_v24 = vld [vmem:[%s827_s9 + $0x90] sm:$0xff] }
  0x2d   : > { %v468_v34 = vmax.f32 %v436_v23, 0.0  ;;  %v438_v35 = vadd.f32 %v406_v22, %v374_v30  ;;  %vm311_vm11 = vcmp.ge.f32.partialorder %v279_v25, 0.0  ;;  %v343_v36 = vmul.f32 0.01, %v279_v25  ;;  %v217_v30 = vld [vmem:[%s814_s30 + $0xb8] sm:$0xff] }
  0x2e   : > { %499 = vst [vmem:[%s862_s11 + $0x38] sm:$0xff] %v467_v28  ;;  %v469_v38 = vmax.f32 %v437_v29, 0.0  ;;  %v280_v39 = vadd.f32 %v820_v2, %v243_v26  ;;  %v281_v40 = vadd.f32 %v820_v2, %v244_v31  ;;  %v245_v41 = vmul.f32 %v809_v0, %v208_v27  ;;  %v218_v31 = vld [vmem:[%s814_s30 + $0xc0] sm:$0xff] }
  0x2f   : > { %500 = vst [vmem:[%s862_s11 + $0x40] sm:$0xff] %v468_v34  ;;  %v470_v42 = vmax.f32 %v438_v35, 0.0  ;;  %v375_v43 = vsel %vm311_vm11, %v279_v25, %v343_v36  ;;  %v246_v44 = vmul.f32 %v809_v0, %v209_v32  ;;  %v247_v45 = vmul.f32 %v809_v0, %v210_v33  ;;  %v216_v25 = vld [vmem:[%s814_s30 + $0xb0] sm:$0xff] }
  0x30   : > { %501 = vst [vmem:[%s862_s11 + $0x48] sm:$0xff] %v469_v38  ;;  %v439_v48 = vadd.f32 %v407_v37, %v375_v43  ;;  %vm312_vm12 = vcmp.ge.f32.partialorder %v280_v39, 0.0  ;;  %v344_v49 = vmul.f32 0.01, %v280_v39  ;;  %vm313_vm13 = vcmp.ge.f32.partialorder %v281_v40, 0.0 }
  0x31   : > { %502 = vst [vmem:[%s862_s11 + $0x50] sm:$0xff] %v470_v42  ;;  %v345_v51 = vmul.f32 0.01, %v281_v40  ;;  %v282_v53 = vadd.f32 %v820_v2, %v245_v41  ;;  %v283_v54 = vadd.f32 %v820_v2, %v246_v44  ;;  %v284_v55 = vadd.f32 %v820_v2, %v247_v45  ;;  %v415_v41 = vld [vmem:[%s827_s9 + $0x98] sm:$0xff]  ;;  %v219_v45 = vld [vmem:[%s814_s30 + $0xc8] sm:$0xff] }
  0x32   : > { %v471_v56 = vmax.f32 %v439_v48, 0.0  ;;  %v376_v57 = vsel %vm312_vm12, %v280_v39, %v344_v49  ;;  %v248_v58 = vmul.f32 %v809_v0, %v211_v46  ;;  %v249_v59 = vmul.f32 %v809_v0, %v212_v47  ;;  %v416_v48 = vld [vmem:[%s827_s9 + $0xa0] sm:$0xff] }
  0x33   : > { %v440_v60 = vadd.f32 %v408_v50, %v376_v57  ;;  %v377_v61 = vsel %vm313_vm13, %v281_v40, %v345_v51  ;;  %vm314_vm14 = vcmp.ge.f32.partialorder %v282_v53, 0.0  ;;  %v346_v62 = vmul.f32 0.01, %v282_v53  ;;  %v417_v51 = vld [vmem:[%s827_s9 + $0xa8] sm:$0xff] }
  0x34   : > { %503 = vst [vmem:[%s862_s11 + $0x58] sm:$0xff] %v471_v56  ;;  %v441_v1 = vadd.f32 %v409_v52, %v377_v61  ;;  %vm315_vm15 = vcmp.ge.f32.partialorder %v283_v54, 0.0  ;;  %v347_v3 = vmul.f32 0.01, %v283_v54  ;;  %vm316_vm0 = vcmp.ge.f32.partialorder %v284_v55, 0.0 }
  0x35   : > { %v472_v5 = vmax.f32 %v440_v60, 0.0  ;;  %v378_v6 = vsel %vm314_vm14, %v282_v53, %v346_v62  ;;  %v348_v7 = vmul.f32 0.01, %v284_v55  ;;  %v285_v9 = vadd.f32 %v820_v2, %v248_v58  ;;  %v418_v60 = vld [vmem:[%s827_s9 + $0xb0] sm:$0xff] }
  0x36   : > { %v473_v10 = vmax.f32 %v441_v1, 0.0  ;;  %v442_v11 = vadd.f32 %v410_v63, %v378_v6  ;;  %v379_v12 = vsel %vm315_vm15, %v283_v54, %v347_v3  ;;  %v286_v13 = vadd.f32 %v820_v2, %v249_v59  ;;  %v419_v1 = vld [vmem:[%s827_s9 + $0xb8] sm:$0xff]  ;;  %v420_v3 = vld [vmem:[%s827_s9 + $0xc0] sm:$0xff] }
  0x37   : > { %504 = vst [vmem:[%s862_s11 + $0x60] sm:$0xff] %v472_v5  ;;  %v443_v16 = vadd.f32 %v411_v4, %v379_v12  ;;  %v380_v17 = vsel %vm316_vm0, %v284_v55, %v348_v7  ;;  %vm317_vm1 = vcmp.ge.f32.partialorder %v285_v9, 0.0  ;;  %v349_v18 = vmul.f32 0.01, %v285_v9  ;;  %v220_v4 = vld [vmem:[%s814_s30 + $0xd0] sm:$0xff]  ;;  %v221_v12 = vld [vmem:[%s814_s30 + $0xd8] sm:$0xff] }
  0x38   : > { %505 = vst [vmem:[%s862_s11 + $0x68] sm:$0xff] %v473_v10  ;;  %v474_v21 = vmax.f32 %v442_v11, 0.0  ;;  %v444_v22 = vadd.f32 %v412_v8, %v380_v17  ;;  %vm318_vm2 = vcmp.ge.f32.partialorder %v286_v13, 0.0  ;;  %v350_v23 = vmul.f32 0.01, %v286_v13 }
  0x39   : > { %v475_v26 = vmax.f32 %v443_v16, 0.0  ;;  %v381_v27 = vsel %vm317_vm1, %v285_v9, %v349_v18  ;;  %v250_v28 = vmul.f32 %v809_v0, %v213_v14  ;;  %v251_v29 = vmul.f32 %v809_v0, %v214_v15  ;;  %v223_v18 = vld [vmem:[%s814_s30 + $0xe8] sm:$0xff] }
  0x3a   : > { %506 = vst [vmem:[%s862_s11 + $0x70] sm:$0xff] %v474_v21  ;;  %v476_v32 = vmax.f32 %v444_v22, 0.0  ;;  %v445_v33 = vadd.f32 %v413_v19, %v381_v27  ;;  %v382_v34 = vsel %vm318_vm2, %v286_v13, %v350_v23  ;;  %v252_v35 = vmul.f32 %v809_v0, %v215_v20  ;;  %v222_v13 = vld [vmem:[%s814_s30 + $0xe0] sm:$0xff]  ;;  %v421_v22 = vld [vmem:[%s827_s9 + $0xc8] sm:$0xff]  ;;  %v224_v27 = vld [vmem:[%s814_s30 + $0xf0] sm:$0xff] }
  0x3b   : > { %507 = vst [vmem:[%s862_s11 + $0x78] sm:$0xff] %v475_v26  ;;  %v446_v36 = vadd.f32 %v414_v24, %v382_v34  ;;  %v287_v37 = vadd.f32 %v820_v2, %v250_v28  ;;  %v288_v38 = vadd.f32 %v820_v2, %v251_v29  ;;  %v253_v39 = vmul.f32 %v809_v0, %v216_v25  ;;  %v225_v28 = vld [vmem:[%s814_s30 + $0xf8] sm:$0xff] }
  0x3c   : > { %508 = vst [vmem:[%s862_s11 + $0x80] sm:$0xff] %v476_v32  ;;  %v477_v40 = vmax.f32 %v445_v33, 0.0  ;;  %v289_v42 = vadd.f32 %v820_v2, %v252_v35  ;;  %v254_v43 = vmul.f32 %v809_v0, %v217_v30  ;;  %v255_v44 = vmul.f32 %v809_v0, %v218_v31  ;;  %v422_v35 = vld [vmem:[%s827_s9 + $0xd0] sm:$0xff] }
  0x3d   : > { %v478_v46 = vmax.f32 %v446_v36, 0.0  ;;  %vm319_vm3 = vcmp.ge.f32.partialorder %v287_v37, 0.0  ;;  %v351_v47 = vmul.f32 0.01, %v287_v37  ;;  %vm320_vm4 = vcmp.ge.f32.partialorder %v288_v38, 0.0 }
  0x3e   : > { %509 = vst [vmem:[%s862_s11 + $0x88] sm:$0xff] %v477_v40  ;;  %v352_v49 = vmul.f32 0.01, %v288_v38  ;;  %vm321_vm5 = vcmp.ge.f32.partialorder %v289_v42, 0.0  ;;  %v353_v50 = vmul.f32 0.01, %v289_v42  ;;  %v290_v52 = vadd.f32 %v820_v2, %v253_v39 }
  0x3f   : > { %510 = vst [vmem:[%s862_s11 + $0x90] sm:$0xff] %v478_v46  ;;  %v383_v53 = vsel %vm319_vm3, %v287_v37, %v351_v47  ;;  %v291_v54 = vadd.f32 %v820_v2, %v254_v43  ;;  %v292_v55 = vadd.f32 %v820_v2, %v255_v44  ;;  %v256_v56 = vmul.f32 %v809_v0, %v219_v45  ;;  %v423_v44 = vld [vmem:[%s827_s9 + $0xd8] sm:$0xff]  ;;  %v424_v47 = vld [vmem:[%s827_s9 + $0xe0] sm:$0xff] }
  0x40   : > { %v447_v57 = vadd.f32 %v415_v41, %v383_v53  ;;  %v384_v58 = vsel %vm320_vm4, %v288_v38, %v352_v49  ;;  %v385_v59 = vsel %vm321_vm5, %v289_v42, %v353_v50  ;;  %vm322_vm6 = vcmp.ge.f32.partialorder %v290_v52, 0.0  ;;  %v425_v50 = vld [vmem:[%s827_s9 + $0xe8] sm:$0xff] }
  0x41   : > { %v448_v61 = vadd.f32 %v416_v48, %v384_v58  ;;  %v449_v62 = vadd.f32 %v417_v51, %v385_v59  ;;  %v354_v63 = vmul.f32 0.01, %v290_v52  ;;  %vm323_vm7 = vcmp.ge.f32.partialorder %v291_v54, 0.0  ;;  %v426_v58 = vld [vmem:[%s827_s9 + $0xf0] sm:$0xff] }
  0x42   : > { %v479_v5 = vmax.f32 %v447_v57, 0.0  ;;  %v355_v6 = vmul.f32 0.01, %v291_v54  ;;  %vm324_vm8 = vcmp.ge.f32.partialorder %v292_v55, 0.0  ;;  %v356_v7 = vmul.f32 0.01, %v292_v55 }
  0x43   : > { %v480_v8 = vmax.f32 %v448_v61, 0.0  ;;  %v481_v9 = vmax.f32 %v449_v62, 0.0  ;;  %v386_v10 = vsel %vm322_vm6, %v290_v52, %v354_v63  ;;  %v293_v11 = vadd.f32 %v820_v2, %v256_v56  ;;  %v427_v62 = vld [vmem:[%s827_s9 + $0xf8] sm:$0xff] }
  0x44   : > { %511 = vst [vmem:[%s862_s11 + $0x98] sm:$0xff] %v479_v5  ;;  %v450_v14 = vadd.f32 %v418_v60, %v386_v10  ;;  %v387_v15 = vsel %vm323_vm7, %v291_v54, %v355_v6  ;;  %v388_v16 = vsel %vm324_vm8, %v292_v55, %v356_v7  ;;  %v257_v17 = vmul.f32 %v809_v0, %v220_v4 }
  0x45   : > { %512 = vst [vmem:[%s862_s11 + $0xa0] sm:$0xff] %v480_v8  ;;  %513 = vst [vmem:[%s862_s11 + $0xa8] sm:$0xff] %v481_v9  ;;  %v451_v19 = vadd.f32 %v419_v1, %v387_v15  ;;  %v452_v20 = vadd.f32 %v420_v3, %v388_v16  ;;  %vm325_vm9 = vcmp.ge.f32.partialorder %v293_v11, 0.0  ;;  %v357_v21 = vmul.f32 0.01, %v293_v11 }
  0x46   : > { %v482_v23 = vmax.f32 %v450_v14, 0.0  ;;  %v294_v24 = vadd.f32 %v820_v2, %v257_v17  ;;  %v258_v25 = vmul.f32 %v809_v0, %v221_v12  ;;  %v259_v26 = vmul.f32 %v809_v0, %v222_v13 }
  0x47   : > { %v483_v29 = vmax.f32 %v451_v19, 0.0  ;;  %v484_v30 = vmax.f32 %v452_v20, 0.0  ;;  %v389_v31 = vsel %vm325_vm9, %v293_v11, %v357_v21  ;;  %v260_v32 = vmul.f32 %v809_v0, %v223_v18 }
  0x48   : > { %514 = vst [vmem:[%s862_s11 + $0xb0] sm:$0xff] %v482_v23  ;;  %v453_v33 = vadd.f32 %v421_v22, %v389_v31  ;;  %vm326_vm10 = vcmp.ge.f32.partialorder %v294_v24, 0.0  ;;  %v358_v34 = vmul.f32 0.01, %v294_v24  ;;  %v295_v36 = vadd.f32 %v820_v2, %v258_v25 }
  0x49   : > { %515 = vst [vmem:[%s862_s11 + $0xb8] sm:$0xff] %v483_v29  ;;  %516 = vst [vmem:[%s862_s11 + $0xc0] sm:$0xff] %v484_v30  ;;  %v296_v37 = vadd.f32 %v820_v2, %v259_v26  ;;  %v297_v38 = vadd.f32 %v820_v2, %v260_v32  ;;  %v261_v39 = vmul.f32 %v809_v0, %v224_v27 }
  0x4a   : > { %v262_v40 = vmul.f32 %v809_v0, %v225_v28  ;;  %v485_v41 = vmax.f32 %v453_v33, 0.0  ;;  %v390_v42 = vsel %vm326_vm10, %v294_v24, %v358_v34  ;;  %vm327_vm11 = vcmp.ge.f32.partialorder %v295_v36, 0.0 }
  0x4b   : > { %v359_v43 = vmul.f32 0.01, %v295_v36  ;;  %v454_v45 = vadd.f32 %v422_v35, %v390_v42  ;;  %vm328_vm12 = vcmp.ge.f32.partialorder %v296_v37, 0.0  ;;  %v360_v46 = vmul.f32 0.01, %v296_v37 }
  0x4c   : > { %vm329_vm13 = vcmp.ge.f32.partialorder %v297_v38, 0.0  ;;  %517 = vst [vmem:[%s862_s11 + $0xc8] sm:$0xff] %v485_v41  ;;  %v361_v49 = vmul.f32 0.01, %v297_v38  ;;  %v298_v51 = vadd.f32 %v820_v2, %v261_v39  ;;  %v299_v0 = vadd.f32 %v820_v2, %v262_v40 }
  0x4d   : > { %v391_v48 = vsel %vm327_vm11, %v295_v36, %v359_v43  ;;  %v486_v52 = vmax.f32 %v454_v45, 0.0  ;;  %v392_v54 = vsel %vm328_vm12, %v296_v37, %v360_v46 }
  0x4e   : > { %v455_v53 = vadd.f32 %v423_v44, %v391_v48  ;;  %v456_v55 = vadd.f32 %v424_v47, %v392_v54  ;;  %v393_v56 = vsel %vm329_vm13, %v297_v38, %v361_v49  ;;  %vm330_vm14 = vcmp.ge.f32.partialorder %v298_v51, 0.0 }
  0x4f   : > { %v362_v57 = vmul.f32 0.01, %v298_v51  ;;  %518 = vst [vmem:[%s862_s11 + $0xd0] sm:$0xff] %v486_v52  ;;  %v457_v60 = vadd.f32 %v425_v50, %v393_v56  ;;  %vm331_vm15 = vcmp.ge.f32.partialorder %v299_v0, 0.0  ;;  %v363_v61 = vmul.f32 0.01, %v299_v0 }
  0x50   : > { %v487_v59 = vmax.f32 %v455_v53, 0.0  ;;  %v488_v2 = vmax.f32 %v456_v55, 0.0 }
  0x51   : > { %v394_v63 = vsel %vm330_vm14, %v298_v51, %v362_v57  ;;  %v489_v1 = vmax.f32 %v457_v60, 0.0  ;;  %v395_v4 = vsel %vm331_vm15, %v299_v0, %v363_v61 }
  0x52   : > { %519 = vst [vmem:[%s862_s11 + $0xd8] sm:$0xff] %v487_v59  ;;  %v458_v3 = vadd.f32 %v426_v58, %v394_v63  ;;  %520 = vst [vmem:[%s862_s11 + $0xe0] sm:$0xff] %v488_v2  ;;  %v459_v5 = vadd.f32 %v427_v62, %v395_v4 }
  0x53   : > { %521 = vst [vmem:[%s862_s11 + $0xe8] sm:$0xff] %v489_v1 }
  0x54   : > { %v490_v6 = vmax.f32 %v458_v3, 0.0  ;;  %v491_v7 = vmax.f32 %v459_v5, 0.0 }
  0x56   : > { %522 = vst [vmem:[%s862_s11 + $0xf0] sm:$0xff] %v490_v6  ;;  %523 = vst [vmem:[%s862_s11 + $0xf8] sm:$0xff] %v491_v7 }
  0x57   : > { %683 = shalt.err (!%p680_p3)
}
  0x58   : > { %s684_s30 = scalar_lea.hbm %s998_s25, 4096  ;;  %s688_s6 = scalar_lea.hbm %s1050_s3, 16384 }
  0x59   : > { %p685_p4 = scmp.ne.s32.totalorder %s998_s25, %s684_s30  ;;  %p689_p9 = scmp.lt.u32.totalorder %s998_s25, %s1050_s3 }
  0x5a   : > { %p690_p10 = scmp.lt.u32.totalorder %s688_s6, %s684_s30  ;;  %p692_p12 = scmp.lt.u32.totalorder %s684_s30, %s998_s25 }
  0x5b   : > { %p686_p7 = pnand %p685_p4, %p795_p5 }
  0x5c   : > { %p691_p11 = por %p690_p10, %p689_p9 }
  0x5d   : > { %p687_p8 = pneg %p686_p7 }
  0x5e   : > { %p693_p13 = por %p692_p12, %p691_p11 }
  0x60   : > { %p694_p0 = pnand %p693_p13, %p687_p8 }
  0x62   : > { %697 = shalt.err (!%p694_p0)
}
  0x63   : > { %s735_s9 = smov 128   ;;  %s736_s10 = smov 8  }
  0x64   : > { %629 = dma.vmem_to_hbm [thread:$0]  (%p795_p5), %s1000_s19, 4096, %s998_s25, %s1006_s16, %s735_s9, %s735_s9, %s736_s10  }
  0x65 PF: > { %p635_p1 = scmp.ge.s32.totalorder %s732_s15, 2  ;;  %s553_s11 = sand.u32 1, %s720_s12  }
  0x66   : > { %s554_s17 = scalar_lea.sflag [#allocation3], %s553_s11 }
  0x67   : > { %p632_p2 = pnand %p635_p1, %p799_p6 }
  0x69   : > { %715 = dma.done.wait (!%p632_p2), %s554_s17, 4096  }
  0x6a   : > { %717 = vsyncadd (!%p632_p2), %s554_s17, 4294963200  ;;  %p13_p3 = scmp.ge.s32.totalorder %s782_s18, 6   ;;  %s1053_s12 = smov %s724_s13 }
  0x6b   : > { %s1054_s13 = smov %s728_s14  ;;  %s1055_s14 = smov %s793_s21 }
  0x6c   : > { %s1056_s15 = smov %s782_s18  ;;  %15 = sbr.rel (!%p13_p3) target bundleno = 3 (0x3), region = 70 }
  0x73   :  { %559 = vsyncpa [#allocation3], 1 }
  0x74   :  { %561 = vsyncpa [#allocation3 + $0x1], 1 }

</bundles_post_ra>
